<compile_context>
chip_gen: v7x
topology: tpu7x:2x2x1
jax: 0.10.0
libtpu: 0.0.40
codegen_flags: <defaults>
</compile_context>

<pallas_src>
import numpy as np
import jax
import jax.numpy as jnp
from jax import lax
from jax.experimental import pallas as pl
from jax.experimental.pallas import tpu as pltpu

# ---------------- config (small shapes consistent with the module) ----------------
NUM_WORDS   = 20
VOCAB       = NUM_WORDS + 1
IN_DIM      = 32          # embedding dim (300 in original, scaled down)
HID_DIM     = 32          # gcn hidden dim (96 in original)
NUM_CLASSES = 3           # unused by forward (ReadoutLayer never uses out_dim)
GAT_HID     = 16          # GAT_NET hidden per head
GAT_HEADS   = 4
GAT_HC      = GAT_HEADS * GAT_HID
LENGTHS     = (6, 10)     # nodes per graph in the batch
N_NODES     = sum(LENGTHS)
BATCH       = len(LENGTHS)
L_MAX       = max(LENGTHS)
NEG_INF     = -1e9


# ---------------- the fused Pallas kernel ----------------

def fused_forward_kernel(scal_ref,                 # SMEM (3,): [att_dst2, att_src2, bias_gat2]
                         wid_ref,                  # [N, 1] int32 word ids
                         adjt_ref,                 # [N, N] adj_t (adj_t[d, s] = weight of edge s->d)
                         embed_ref,                # [V, IN] embedding table
                         w1t_ref, b1_ref,          # [IN, HID], [1, HID]
                         wcat_ref, bcat_ref,       # [HID, HC+HID], [1, HC+HID]  (= [wg1 | wemb^T])
                         adst_qh_ref,              # [HC, H]  packed per-head att_dst
                         asrc_hq_ref,              # [H, HC]  packed per-head att_src
                         bg1_ref,                  # [1, HC]
                         wg2_ref, wg2r_ref,        # [HC, 1], [1, HC]
                         belt_nb_ref,              # [N, B] graph membership (max pool)
                         belt_bn_ref,              # [B, N] graph membership (mean matmul)
                         invcnt_ref,               # [B, 1] 1/len per graph
                         apred_ref,                # out [N, N]
                         xpool_ref):               # out [B, HID]
    f32, bf16 = jnp.float32, jnp.bfloat16
    n = adjt_ref.shape[0]

    # ---------- embedding gather as exact one-hot matmul (f32) ----------
    wid = wid_ref[...]                                                   # [N,1] int32
    vocab_iota = lax.broadcasted_iota(jnp.int32, (n, VOCAB), 1)
    onehot = (vocab_iota == wid).astype(f32)                             # [N, V]
    x = jnp.dot(onehot, embed_ref[...], preferred_element_type=f32)      # [N, IN]

    # ---------- GraphLayer: h = A_ori^T @ tanh(x W1^T + b1) ----------
    adj_t = adjt_ref[...]                                                # already transposed
    h_lin = jnp.tanh(jnp.dot(x, w1t_ref[...], preferred_element_type=f32) + b1_ref[...])
    h = jnp.dot(adj_t, h_lin, preferred_element_type=f32)                # [N, HID]

    # adjacency mask with self loops (GATConv adds self loops)
    row_ids = lax.broadcasted_iota(jnp.int32, (n, n), 0)
    col_ids = lax.broadcasted_iota(jnp.int32, (n, n), 1)
    gmask = (adj_t != 0.0) | (row_ids == col_ids)                        # bool [N, N]

    # ---------- fused projection: [xg | emb_lin] in one MXU pass ----------
    hcat = jnp.dot(h, wcat_ref[...], preferred_element_type=f32) + bcat_ref[...]   # [N, HC+HID]
    xg = hcat[:, :GAT_HC]                                                # [N, HC]
    emb = jnp.tanh(hcat[:, GAT_HC:])                                     # [N, HID]

    # ---------- GAT layer 1: packed attention coeffs + per-head aggregation ----------
    xg_b = xg.astype(bf16)
    a_d = jnp.dot(xg_b, adst_qh_ref[...].astype(bf16),
                  preferred_element_type=f32)                            # [N, H]
    a_s = lax.dot_general(asrc_hq_ref[...].astype(bf16), xg_b,
                          (((1,), (1,)), ((), ())),
                          preferred_element_type=f32)                    # [H, N]

    bg1 = bg1_ref[...]                                                   # [1, HC]
    head_outs = []
    for k in range(GAT_HEADS):                                           # H=4, unrolled
        logit = a_d[:, k:k + 1] + a_s[k:k + 1, :]                        # [N,1]+[1,N] -> [N,N]
        logit = jnp.where(logit > 0, logit, 0.2 * logit)                 # leaky_relu(0.2)
        logit = jnp.where(gmask, logit, NEG_INF)
        logit = logit - jnp.max(logit, axis=-1, keepdims=True)
        p = jnp.exp(logit)
        p = p * pl.reciprocal(jnp.sum(p, axis=-1, keepdims=True), approx=True)
        xh = xg_b[:, k * GAT_HID:(k + 1) * GAT_HID]                      # [N, C] per-head block
        agg = jnp.dot(p.astype(bf16), xh, preferred_element_type=f32)    # [N, C]
        head_outs.append(jnp.maximum(agg + bg1[:, k * GAT_HID:(k + 1) * GAT_HID], 0.0))
    o1 = jnp.concatenate(head_outs, axis=-1)                             # [N, HC]

    # ---------- GAT layer 2 (single head, hidden = 1) ----------
    o1_b = o1.astype(bf16)
    xg2_col = jnp.dot(o1_b, wg2_ref[...].astype(bf16),
                      preferred_element_type=f32)                        # [N, 1]
    xg2_row = lax.dot_general(wg2r_ref[...].astype(bf16), o1_b,
                              (((1,), (1,)), ((), ())),
                              preferred_element_type=f32)                # [1, N]
    adst2 = scal_ref[0]
    asrc2 = scal_ref[1]
    bg2 = scal_ref[2]
    logit2 = adst2 * xg2_col + asrc2 * xg2_row                           # [N, N]
    logit2 = jnp.where(logit2 > 0, logit2, 0.2 * logit2)
    logit2 = jnp.where(gmask, logit2, NEG_INF)
    logit2 = logit2 - jnp.max(logit2, axis=-1, keepdims=True)
    p2 = jnp.exp(logit2)
    o2 = (jnp.sum(p2 * xg2_row, axis=-1, keepdims=True)
          * pl.reciprocal(jnp.sum(p2, axis=-1, keepdims=True), approx=True) + bg2)
    att = jax.nn.sigmoid(o2)                                             # [N, 1]

    # ---------- ReadoutLayer: z = att * emb, dot-product decode ----------
    z = att * emb                                                        # [N, HID]
    # NT contraction; Mosaic handles the transposed rhs internally (one tiny pass).
    apred_ref[...] = jax.nn.sigmoid(
        lax.dot_general(z, z, (((1,), (1,)), ((), ())),
                        preferred_element_type=f32))                     # sigmoid(z z^T)

    # ---------- pooling: mean via one MXU matmul, masked max per graph ----------
    sums = jnp.dot(belt_bn_ref[...].astype(bf16), z.astype(bf16),
                   preferred_element_type=f32)                           # [B, HID]
    belt_nb = belt_nb_ref[...]                                           # [N, B]
    for b in range(BATCH):                                               # B=2, unrolled
        colm = belt_nb[:, b:b + 1]                                       # [N, 1]
        xmax_b = jnp.max(z + (colm - 1.0) * 1e9, axis=0, keepdims=True)  # [1, HID]
        xpool_ref[b:b + 1, :] = xmax_b + sums[b:b + 1, :] * invcnt_ref[b:b + 1, :]


# ---------------- pallas_call wrapper ----------------

_VMEM = pl.BlockSpec(memory_space=pltpu.MemorySpace.VMEM)
_SMEM = pl.BlockSpec(memory_space=pltpu.MemorySpace.SMEM)


def model_forward(params, word_ids, edge_src, edge_dst, edge_attr,
                  belt_nb, belt_bn, inv_cnt):
    n = word_ids.shape[0]
    # COO -> dense scatter, built directly in the TRANSPOSED orientation the kernel
    # needs (no in-kernel transpose).  Stays in XLA so A_ori is bit-exact.
    adj_t = jnp.zeros((n, n), jnp.float32).at[edge_dst, edge_src].add(edge_attr)
    a_ori = adj_t.T

    vmem_inputs = [
        word_ids.reshape(n, 1).astype(jnp.int32),
        adj_t,
        params['embed'], params['w1t'], params['b1'],
        params['wcat'], params['bcat'],
        params['adst_qh'], params['asrc_hq'], params['bg1'],
        params['wg2'], params['wg2_row'],
        belt_nb, belt_bn, inv_cnt,
    ]
    out_shape = (jax.ShapeDtypeStruct((n, n), jnp.float32),
                 jax.ShapeDtypeStruct((BATCH, HID_DIM), jnp.float32))

    a_pred, x_pool = pl.pallas_call(
        fused_forward_kernel,
        in_specs=[_SMEM] + [_VMEM] * len(vmem_inputs),
        out_specs=(_VMEM, _VMEM),
        out_shape=out_shape,
    )(params['scal2'], *vmem_inputs)
    return a_pred, x_pool, a_ori


# ---------------- parameter init (deterministic, matches module shapes) ----------------

def xavier(key, shape, fan_in, fan_out):
    lim = float(np.sqrt(6.0 / (fan_in + fan_out)))
    return jax.random.uniform(key, shape, jnp.float32, -lim, lim)


def init_params(key):
    ks = jax.random.split(key, 12)
    embed = jax.random.normal(ks[0], (VOCAB, IN_DIM), jnp.float32)
    embed = embed.at[NUM_WORDS].set(0.0)                        # padding_idx row = 0
    w1 = xavier(ks[1], (HID_DIM, IN_DIM), IN_DIM, HID_DIM)      # gcn.encode Linear
    wg1 = xavier(ks[2], (HID_DIM, GAT_HC), HID_DIM, GAT_HC)
    asrc1 = xavier(ks[3], (GAT_HEADS, GAT_HID), GAT_HID, GAT_HID)
    adst1 = xavier(ks[4], (GAT_HID, GAT_HEADS), GAT_HID, GAT_HID)
    wg2 = xavier(ks[5], (GAT_HC, 1), GAT_HC, 1)
    asrc2 = xavier(ks[6], (1, 1), 1, 1)
    adst2 = xavier(ks[7], (1, 1), 1, 1)
    wemb = xavier(ks[8], (HID_DIM, HID_DIM), HID_DIM, HID_DIM)  # read.emb Linear
    b1 = jnp.zeros((1, HID_DIM), jnp.float32)
    bemb = jnp.zeros((1, HID_DIM), jnp.float32)
    bg1 = jnp.zeros((1, GAT_HC), jnp.float32)
    bg2 = jnp.zeros((1, 1), jnp.float32)

    # ---- host-side repacks for the fused kernel (done once at init time) ----
    blockmask = jnp.kron(jnp.eye(GAT_HEADS, dtype=jnp.float32),
                         jnp.ones((1, GAT_HID), jnp.float32))             # [H, HC]
    asrc_hq = blockmask * jnp.tile(asrc1, (1, GAT_HEADS))                 # [H, HC]
    adst_qh = blockmask.T * jnp.tile(adst1, (GAT_HEADS, 1))               # [HC, H]
    wcat = jnp.concatenate([wg1, wemb.T], axis=1)                         # [HID, HC+HID]
    bcat = jnp.concatenate([jnp.zeros((1, GAT_HC), jnp.float32), bemb], axis=1)
    wg2_row = wg2.T                                                       # [1, HC]
    scal2 = jnp.array([adst2[0, 0], asrc2[0, 0], bg2[0, 0]], jnp.float32)

    return dict(
        embed=embed,
        w1t=w1.T, b1=b1,
        wg1=wg1, bg1=bg1,
        asrc1=asrc1, adst1=adst1,
        wg2=wg2, asrc2=asrc2, adst2=adst2, bg2=bg2,
        wembt=wemb.T, bemb=bemb,
        wcat=wcat, bcat=bcat,
        adst_qh=adst_qh, asrc_hq=asrc_hq, wg2_row=wg2_row, scal2=scal2,
    )


# ---------------- pure-JAX reference (sanity check) ----------------

def reference(params, word_ids, edge_src, edge_dst, edge_attr, node_idx, mask):
    n = word_ids.shape[0]
    x = params['embed'][word_ids]
    a = jnp.zeros((n, n)).at[edge_src, edge_dst].add(edge_attr)
    h = jnp.tanh(x @ params['w1t'] + params['b1'])
    h = a.T @ h
    gm = (a.T != 0.0) | jnp.eye(n, dtype=bool)
    xg = h @ params['wg1']
    outs = []
    for k in range(GAT_HEADS):
        xh = xg[:, k * GAT_HID:(k + 1) * GAT_HID]
        logit = xh @ params['adst1'][:, k:k + 1] + (xh @ params['asrc1'][k])[None, :]
        logit = jnp.where(logit > 0, logit, 0.2 * logit)
        logit = jnp.where(gm, logit, NEG_INF)
        outs.append(jax.nn.softmax(logit, axis=1) @ xh)
    o1 = jnp.maximum(jnp.concatenate(outs, axis=1) + params['bg1'], 0.0)
    xg2 = o1 @ params['wg2']
    logit2 = params['adst2'][0, 0] * xg2 + params['asrc2'][0, 0] * xg2[:, 0][None, :]
    logit2 = jnp.where(logit2 > 0, logit2, 0.2 * logit2)
    logit2 = jnp.where(gm, logit2, NEG_INF)
    att_ = jax.nn.sigmoid(jax.nn.softmax(logit2, axis=1) @ xg2 + params['bg2'])
    emb_ = jnp.tanh(h @ params['wembt'] + params['bemb'])
    z = att_ * emb_
    a_pred = jax.nn.sigmoid(z @ z.T)
    z_pad = jnp.concatenate([z, jnp.zeros((1, HID_DIM))], axis=0)
    zb = z_pad[node_idx]
    xmax = jnp.max(zb + (mask - 1.0) * 1e9, axis=1)
    xmean = jnp.sum(zb * mask, axis=1) / jnp.sum(mask, axis=1)
    return a_pred, xmax + xmean, a


# ---------------- main ----------------

if __name__ == "__main__":
    key = jax.random.PRNGKey(0)
    pkey, wkey, ekey = jax.random.split(key, 3)
    params = init_params(pkey)

    # build a small 2-graph batch: bidirectional chain edges within each graph
    edges = []
    off = 0
    for l in LENGTHS:
        for i in range(l - 1):
            edges.append((off + i, off + i + 1))
            edges.append((off + i + 1, off + i))
        off += l
    edge_index = np.asarray(edges, dtype=np.int32).T          # [2, E]
    n_edges = edge_index.shape[1]

    word_ids = jax.random.randint(wkey, (N_NODES,), 0, NUM_WORDS, dtype=jnp.int32)
    edge_attr = jax.random.uniform(ekey, (n_edges,), jnp.float32, 0.2, 1.0)
    edge_src = jnp.asarray(edge_index[0])
    edge_dst = jnp.asarray(edge_index[1])

    # graph membership (both layouts) + reciprocal counts for the kernel pooling
    belt_nb_np = np.zeros((N_NODES, BATCH), dtype=np.float32)
    node_idx_np = np.full((BATCH, L_MAX), N_NODES, dtype=np.int32)
    mask_np = np.zeros((BATCH, L_MAX, 1), dtype=np.float32)
    off = 0
    for b, l in enumerate(LENGTHS):
        belt_nb_np[off:off + l, b] = 1.0
        node_idx_np[b, :l] = np.arange(off, off + l)
        mask_np[b, :l, 0] = 1.0
        off += l
    belt_nb = jnp.asarray(belt_nb_np)
    belt_bn = jnp.asarray(np.ascontiguousarray(belt_nb_np.T))
    inv_cnt = jnp.asarray((1.0 / np.asarray(LENGTHS, np.float32)).reshape(BATCH, 1))
    node_idx = jnp.asarray(node_idx_np)
    mask = jnp.asarray(mask_np)

    fwd = jax.jit(model_forward)
    a_pred, x_out, a_ori = fwd(params, word_ids, edge_src, edge_dst, edge_attr,
                               belt_nb, belt_bn, inv_cnt)
    jax.block_until_ready((a_pred, x_out, a_ori))

    # sanity check against a full-precision pure-JAX reference
    with jax.default_matmul_precision("float32"):
        ra, rx, rA = reference(params, word_ids, edge_src, edge_dst, edge_attr,
                               node_idx, mask)
    np.testing.assert_allclose(np.asarray(a_pred), np.asarray(ra), rtol=2.5e-2, atol=2.5e-2)
    np.testing.assert_allclose(np.asarray(x_out), np.asarray(rx), rtol=2.5e-2, atol=2.5e-2)
    np.testing.assert_allclose(np.asarray(a_ori), np.asarray(rA), rtol=1e-6, atol=1e-6)

    assert a_pred.shape == (N_NODES, N_NODES)
    assert x_out.shape == (BATCH, HID_DIM)
    assert a_ori.shape == (N_NODES, N_NODES)
    print("KERNEL_OK")
</pallas_src>

<mosaic_0001>
module attributes {stable_mosaic.version = 11 : i64} {
  func.func @fused_forward_kernel(%arg0: memref<3xf32, #tpu.memory_space<smem>>, %arg1: memref<16x1xi32, #tpu.memory_space<vmem>>, %arg2: memref<16x16xf32, #tpu.memory_space<vmem>>, %arg3: memref<21x32xf32, #tpu.memory_space<vmem>>, %arg4: memref<32x32xf32, #tpu.memory_space<vmem>>, %arg5: memref<1x32xf32, #tpu.memory_space<vmem>>, %arg6: memref<32x96xf32, #tpu.memory_space<vmem>>, %arg7: memref<1x96xf32, #tpu.memory_space<vmem>>, %arg8: memref<64x4xf32, #tpu.memory_space<vmem>>, %arg9: memref<4x64xf32, #tpu.memory_space<vmem>>, %arg10: memref<1x64xf32, #tpu.memory_space<vmem>>, %arg11: memref<64x1xf32, #tpu.memory_space<vmem>>, %arg12: memref<1x64xf32, #tpu.memory_space<vmem>>, %arg13: memref<16x2xf32, #tpu.memory_space<vmem>>, %arg14: memref<2x16xf32, #tpu.memory_space<vmem>>, %arg15: memref<2x1xf32, #tpu.memory_space<vmem>>, %arg16: memref<16x16xf32, #tpu.memory_space<vmem>>, %arg17: memref<2x32xf32, #tpu.memory_space<vmem>>) attributes {dimension_semantics = [], scalar_prefetch = 0 : i64, scratch_operands = 0 : i64, tpu.core_type = #tpu.core_type<tc>} {
    %c0 = arith.constant 0 : index
    %c0_0 = arith.constant 0 : index
    %0 = vector.load %arg1[%c0, %c0_0] : memref<16x1xi32, #tpu.memory_space<vmem>>, vector<16x1xi32>
    %1 = tpu.iota {dimensions = array<i32: 1>} : vector<16x21xi32>
    %2 = vector.broadcast %0 : vector<16x1xi32> to vector<16x21xi32>
    %3 = arith.cmpi eq, %1, %2 : vector<16x21xi32>
    %4 = arith.extui %3 : vector<16x21xi1> to vector<16x21xi32>
    %5 = arith.sitofp %4 : vector<16x21xi32> to vector<16x21xf32>
    %c0_1 = arith.constant 0 : index
    %c0_2 = arith.constant 0 : index
    %6 = vector.load %arg3[%c0_1, %c0_2] : memref<21x32xf32, #tpu.memory_space<vmem>>, vector<21x32xf32>
    %cst = arith.constant dense<0.000000e+00> : vector<16x32xf32>
    %7 = tpu.matmul %5, %6, %cst {dimension_numbers = #tpu.dot_dimension_numbers<[1], [0], [0], [1], [0, 0, 1, 1], [], []>} : vector<16x21xf32>, vector<21x32xf32>, vector<16x32xf32> -> vector<16x32xf32>
    %c0_3 = arith.constant 0 : index
    %c0_4 = arith.constant 0 : index
    %8 = vector.load %arg2[%c0_3, %c0_4] : memref<16x16xf32, #tpu.memory_space<vmem>>, vector<16x16xf32>
    %c0_5 = arith.constant 0 : index
    %c0_6 = arith.constant 0 : index
    %9 = vector.load %arg4[%c0_5, %c0_6] : memref<32x32xf32, #tpu.memory_space<vmem>>, vector<32x32xf32>
    %cst_7 = arith.constant dense<0.000000e+00> : vector<16x32xf32>
    %10 = tpu.matmul %7, %9, %cst_7 {dimension_numbers = #tpu.dot_dimension_numbers<[1], [0], [0], [1], [0, 0, 1, 1], [], []>} : vector<16x32xf32>, vector<32x32xf32>, vector<16x32xf32> -> vector<16x32xf32>
    %c0_8 = arith.constant 0 : index
    %c0_9 = arith.constant 0 : index
    %11 = vector.load %arg5[%c0_8, %c0_9] : memref<1x32xf32, #tpu.memory_space<vmem>>, vector<1x32xf32>
    %12 = vector.broadcast %11 : vector<1x32xf32> to vector<16x32xf32>
    %13 = arith.addf %10, %12 : vector<16x32xf32>
    %14 = math.tanh %13 : vector<16x32xf32>
    %cst_10 = arith.constant dense<0.000000e+00> : vector<16x32xf32>
    %15 = tpu.matmul %8, %14, %cst_10 {dimension_numbers = #tpu.dot_dimension_numbers<[1], [0], [0], [1], [0, 0, 1, 1], [], []>} : vector<16x16xf32>, vector<16x32xf32>, vector<16x32xf32> -> vector<16x32xf32>
    %16 = tpu.iota {dimensions = array<i32: 0>} : vector<16x16xi32>
    %17 = tpu.iota {dimensions = array<i32: 1>} : vector<16x16xi32>
    %cst_11 = arith.constant 0.000000e+00 : f32
    %18 = vector.broadcast %cst_11 : f32 to vector<16x16xf32>
    %19 = arith.cmpf one, %8, %18 : vector<16x16xf32>
    %20 = arith.cmpi eq, %16, %17 : vector<16x16xi32>
    %21 = arith.ori %19, %20 : vector<16x16xi1>
    %c0_12 = arith.constant 0 : index
    %c0_13 = arith.constant 0 : index
    %22 = vector.load %arg6[%c0_12, %c0_13] : memref<32x96xf32, #tpu.memory_space<vmem>>, vector<32x96xf32>
    %cst_14 = arith.constant dense<0.000000e+00> : vector<16x96xf32>
    %23 = tpu.matmul %15, %22, %cst_14 {dimension_numbers = #tpu.dot_dimension_numbers<[1], [0], [0], [1], [0, 0, 1, 1], [], []>} : vector<16x32xf32>, vector<32x96xf32>, vector<16x96xf32> -> vector<16x96xf32>
    %c0_15 = arith.constant 0 : index
    %c0_16 = arith.constant 0 : index
    %24 = vector.load %arg7[%c0_15, %c0_16] : memref<1x96xf32, #tpu.memory_space<vmem>>, vector<1x96xf32>
    %25 = vector.broadcast %24 : vector<1x96xf32> to vector<16x96xf32>
    %26 = arith.addf %23, %25 : vector<16x96xf32>
    %27 = vector.extract_strided_slice %26 {offsets = [0, 0], sizes = [16, 64], strides = [1, 1]} : vector<16x96xf32> to vector<16x64xf32>
    %28 = vector.extract_strided_slice %26 {offsets = [0, 64], sizes = [16, 32], strides = [1, 1]} : vector<16x96xf32> to vector<16x32xf32>
    %29 = math.tanh %28 : vector<16x32xf32>
    %30 = arith.truncf %27 : vector<16x64xf32> to vector<16x64xbf16>
    %c0_17 = arith.constant 0 : index
    %c0_18 = arith.constant 0 : index
    %31 = vector.load %arg8[%c0_17, %c0_18] : memref<64x4xf32, #tpu.memory_space<vmem>>, vector<64x4xf32>
    %32 = arith.truncf %31 : vector<64x4xf32> to vector<64x4xbf16>
    %cst_19 = arith.constant dense<0.000000e+00> : vector<16x4xf32>
    %33 = tpu.matmul %30, %32, %cst_19 {dimension_numbers = #tpu.dot_dimension_numbers<[1], [0], [0], [1], [0, 0, 1, 1], [], []>} : vector<16x64xbf16>, vector<64x4xbf16>, vector<16x4xf32> -> vector<16x4xf32>
    %c0_20 = arith.constant 0 : index
    %c0_21 = arith.constant 0 : index
    %34 = vector.load %arg9[%c0_20, %c0_21] : memref<4x64xf32, #tpu.memory_space<vmem>>, vector<4x64xf32>
    %35 = arith.truncf %34 : vector<4x64xf32> to vector<4x64xbf16>
    %cst_22 = arith.constant dense<0.000000e+00> : vector<4x16xf32>
    %36 = tpu.matmul %35, %30, %cst_22 {dimension_numbers = #tpu.dot_dimension_numbers<[1], [1], [0], [0], [0, 0, 1, 0], [], []>} : vector<4x64xbf16>, vector<16x64xbf16>, vector<4x16xf32> -> vector<4x16xf32>
    %c0_23 = arith.constant 0 : index
    %c0_24 = arith.constant 0 : index
    %37 = vector.load %arg10[%c0_23, %c0_24] : memref<1x64xf32, #tpu.memory_space<vmem>>, vector<1x64xf32>
    %38 = vector.extract_strided_slice %33 {offsets = [0, 0], sizes = [16, 1], strides = [1, 1]} : vector<16x4xf32> to vector<16x1xf32>
    %39 = vector.extract_strided_slice %36 {offsets = [0, 0], sizes = [1, 16], strides = [1, 1]} : vector<4x16xf32> to vector<1x16xf32>
    %40 = vector.broadcast %38 : vector<16x1xf32> to vector<16x16xf32>
    %41 = vector.broadcast %39 : vector<1x16xf32> to vector<16x16xf32>
    %42 = arith.addf %40, %41 : vector<16x16xf32>
    %cst_25 = arith.constant 0.000000e+00 : f32
    %43 = vector.broadcast %cst_25 : f32 to vector<16x16xf32>
    %44 = arith.cmpf ogt, %42, %43 : vector<16x16xf32>
    %cst_26 = arith.constant 2.000000e-01 : f32
    %45 = vector.broadcast %cst_26 : f32 to vector<16x16xf32>
    %46 = arith.mulf %45, %42 : vector<16x16xf32>
    %47 = arith.select %44, %42, %46 : vector<16x16xi1>, vector<16x16xf32>
    %cst_27 = arith.constant -1.000000e+09 : f32
    %48 = vector.broadcast %cst_27 : f32 to vector<16x16xf32>
    %49 = arith.select %21, %47, %48 : vector<16x16xi1>, vector<16x16xf32>
    %cst_28 = arith.constant dense<0xFF800000> : vector<16xf32>
    %50 = vector.multi_reduction <maximumf>, %49, %cst_28 [1] : vector<16x16xf32> to vector<16xf32>
    %51 = vector.shape_cast %50 : vector<16xf32> to vector<16x1xf32>
    %52 = vector.broadcast %51 : vector<16x1xf32> to vector<16x16xf32>
    %53 = arith.subf %49, %52 : vector<16x16xf32>
    %54 = math.exp %53 : vector<16x16xf32>
    %cst_29 = arith.constant dense<0.000000e+00> : vector<16xf32>
    %55 = vector.multi_reduction <add>, %54, %cst_29 [1] : vector<16x16xf32> to vector<16xf32>
    %56 = vector.shape_cast %55 : vector<16xf32> to vector<16x1xf32>
    %57 = tpu.reciprocal %56 {approx = true} : vector<16x1xf32> -> vector<16x1xf32>
    %58 = vector.broadcast %57 : vector<16x1xf32> to vector<16x16xf32>
    %59 = arith.mulf %54, %58 : vector<16x16xf32>
    %60 = vector.extract_strided_slice %30 {offsets = [0, 0], sizes = [16, 16], strides = [1, 1]} : vector<16x64xbf16> to vector<16x16xbf16>
    %61 = arith.truncf %59 : vector<16x16xf32> to vector<16x16xbf16>
    %cst_30 = arith.constant dense<0.000000e+00> : vector<16x16xf32>
    %62 = tpu.matmul %61, %60, %cst_30 {dimension_numbers = #tpu.dot_dimension_numbers<[1], [0], [0], [1], [0, 0, 1, 1], [], []>} : vector<16x16xbf16>, vector<16x16xbf16>, vector<16x16xf32> -> vector<16x16xf32>
    %63 = vector.extract_strided_slice %37 {offsets = [0, 0], sizes = [1, 16], strides = [1, 1]} : vector<1x64xf32> to vector<1x16xf32>
    %64 = vector.broadcast %63 : vector<1x16xf32> to vector<16x16xf32>
    %65 = arith.addf %62, %64 : vector<16x16xf32>
    %cst_31 = arith.constant 0.000000e+00 : f32
    %66 = vector.broadcast %cst_31 : f32 to vector<16x16xf32>
    %67 = arith.maximumf %65, %66 : vector<16x16xf32>
    %68 = vector.extract_strided_slice %33 {offsets = [0, 1], sizes = [16, 1], strides = [1, 1]} : vector<16x4xf32> to vector<16x1xf32>
    %69 = vector.extract_strided_slice %36 {offsets = [1, 0], sizes = [1, 16], strides = [1, 1]} : vector<4x16xf32> to vector<1x16xf32>
    %70 = vector.broadcast %68 : vector<16x1xf32> to vector<16x16xf32>
    %71 = vector.broadcast %69 : vector<1x16xf32> to vector<16x16xf32>
    %72 = arith.addf %70, %71 : vector<16x16xf32>
    %cst_32 = arith.constant 0.000000e+00 : f32
    %73 = vector.broadcast %cst_32 : f32 to vector<16x16xf32>
    %74 = arith.cmpf ogt, %72, %73 : vector<16x16xf32>
    %cst_33 = arith.constant 2.000000e-01 : f32
    %75 = vector.broadcast %cst_33 : f32 to vector<16x16xf32>
    %76 = arith.mulf %75, %72 : vector<16x16xf32>
    %77 = arith.select %74, %72, %76 : vector<16x16xi1>, vector<16x16xf32>
    %cst_34 = arith.constant -1.000000e+09 : f32
    %78 = vector.broadcast %cst_34 : f32 to vector<16x16xf32>
    %79 = arith.select %21, %77, %78 : vector<16x16xi1>, vector<16x16xf32>
    %cst_35 = arith.constant dense<0xFF800000> : vector<16xf32>
    %80 = vector.multi_reduction <maximumf>, %79, %cst_35 [1] : vector<16x16xf32> to vector<16xf32>
    %81 = vector.shape_cast %80 : vector<16xf32> to vector<16x1xf32>
    %82 = vector.broadcast %81 : vector<16x1xf32> to vector<16x16xf32>
    %83 = arith.subf %79, %82 : vector<16x16xf32>
    %84 = math.exp %83 : vector<16x16xf32>
    %cst_36 = arith.constant dense<0.000000e+00> : vector<16xf32>
    %85 = vector.multi_reduction <add>, %84, %cst_36 [1] : vector<16x16xf32> to vector<16xf32>
    %86 = vector.shape_cast %85 : vector<16xf32> to vector<16x1xf32>
    %87 = tpu.reciprocal %86 {approx = true} : vector<16x1xf32> -> vector<16x1xf32>
    %88 = vector.broadcast %87 : vector<16x1xf32> to vector<16x16xf32>
    %89 = arith.mulf %84, %88 : vector<16x16xf32>
    %90 = vector.extract_strided_slice %30 {offsets = [0, 16], sizes = [16, 16], strides = [1, 1]} : vector<16x64xbf16> to vector<16x16xbf16>
    %91 = arith.truncf %89 : vector<16x16xf32> to vector<16x16xbf16>
    %cst_37 = arith.constant dense<0.000000e+00> : vector<16x16xf32>
    %92 = tpu.matmul %91, %90, %cst_37 {dimension_numbers = #tpu.dot_dimension_numbers<[1], [0], [0], [1], [0, 0, 1, 1], [], []>} : vector<16x16xbf16>, vector<16x16xbf16>, vector<16x16xf32> -> vector<16x16xf32>
    %93 = vector.extract_strided_slice %37 {offsets = [0, 16], sizes = [1, 16], strides = [1, 1]} : vector<1x64xf32> to vector<1x16xf32>
    %94 = vector.broadcast %93 : vector<1x16xf32> to vector<16x16xf32>
    %95 = arith.addf %92, %94 : vector<16x16xf32>
    %cst_38 = arith.constant 0.000000e+00 : f32
    %96 = vector.broadcast %cst_38 : f32 to vector<16x16xf32>
    %97 = arith.maximumf %95, %96 : vector<16x16xf32>
    %98 = vector.extract_strided_slice %33 {offsets = [0, 2], sizes = [16, 1], strides = [1, 1]} : vector<16x4xf32> to vector<16x1xf32>
    %99 = vector.extract_strided_slice %36 {offsets = [2, 0], sizes = [1, 16], strides = [1, 1]} : vector<4x16xf32> to vector<1x16xf32>
    %100 = vector.broadcast %98 : vector<16x1xf32> to vector<16x16xf32>
    %101 = vector.broadcast %99 : vector<1x16xf32> to vector<16x16xf32>
    %102 = arith.addf %100, %101 : vector<16x16xf32>
    %cst_39 = arith.constant 0.000000e+00 : f32
    %103 = vector.broadcast %cst_39 : f32 to vector<16x16xf32>
    %104 = arith.cmpf ogt, %102, %103 : vector<16x16xf32>
    %cst_40 = arith.constant 2.000000e-01 : f32
    %105 = vector.broadcast %cst_40 : f32 to vector<16x16xf32>
    %106 = arith.mulf %105, %102 : vector<16x16xf32>
    %107 = arith.select %104, %102, %106 : vector<16x16xi1>, vector<16x16xf32>
    %cst_41 = arith.constant -1.000000e+09 : f32
    %108 = vector.broadcast %cst_41 : f32 to vector<16x16xf32>
    %109 = arith.select %21, %107, %108 : vector<16x16xi1>, vector<16x16xf32>
    %cst_42 = arith.constant dense<0xFF800000> : vector<16xf32>
    %110 = vector.multi_reduction <maximumf>, %109, %cst_42 [1] : vector<16x16xf32> to vector<16xf32>
    %111 = vector.shape_cast %110 : vector<16xf32> to vector<16x1xf32>
    %112 = vector.broadcast %111 : vector<16x1xf32> to vector<16x16xf32>
    %113 = arith.subf %109, %112 : vector<16x16xf32>
    %114 = math.exp %113 : vector<16x16xf32>
    %cst_43 = arith.constant dense<0.000000e+00> : vector<16xf32>
    %115 = vector.multi_reduction <add>, %114, %cst_43 [1] : vector<16x16xf32> to vector<16xf32>
    %116 = vector.shape_cast %115 : vector<16xf32> to vector<16x1xf32>
    %117 = tpu.reciprocal %116 {approx = true} : vector<16x1xf32> -> vector<16x1xf32>
    %118 = vector.broadcast %117 : vector<16x1xf32> to vector<16x16xf32>
    %119 = arith.mulf %114, %118 : vector<16x16xf32>
    %120 = vector.extract_strided_slice %30 {offsets = [0, 32], sizes = [16, 16], strides = [1, 1]} : vector<16x64xbf16> to vector<16x16xbf16>
    %121 = arith.truncf %119 : vector<16x16xf32> to vector<16x16xbf16>
    %cst_44 = arith.constant dense<0.000000e+00> : vector<16x16xf32>
    %122 = tpu.matmul %121, %120, %cst_44 {dimension_numbers = #tpu.dot_dimension_numbers<[1], [0], [0], [1], [0, 0, 1, 1], [], []>} : vector<16x16xbf16>, vector<16x16xbf16>, vector<16x16xf32> -> vector<16x16xf32>
    %123 = vector.extract_strided_slice %37 {offsets = [0, 32], sizes = [1, 16], strides = [1, 1]} : vector<1x64xf32> to vector<1x16xf32>
    %124 = vector.broadcast %123 : vector<1x16xf32> to vector<16x16xf32>
    %125 = arith.addf %122, %124 : vector<16x16xf32>
    %cst_45 = arith.constant 0.000000e+00 : f32
    %126 = vector.broadcast %cst_45 : f32 to vector<16x16xf32>
    %127 = arith.maximumf %125, %126 : vector<16x16xf32>
    %128 = vector.extract_strided_slice %33 {offsets = [0, 3], sizes = [16, 1], strides = [1, 1]} : vector<16x4xf32> to vector<16x1xf32>
    %129 = vector.extract_strided_slice %36 {offsets = [3, 0], sizes = [1, 16], strides = [1, 1]} : vector<4x16xf32> to vector<1x16xf32>
    %130 = vector.broadcast %128 : vector<16x1xf32> to vector<16x16xf32>
    %131 = vector.broadcast %129 : vector<1x16xf32> to vector<16x16xf32>
    %132 = arith.addf %130, %131 : vector<16x16xf32>
    %cst_46 = arith.constant 0.000000e+00 : f32
    %133 = vector.broadcast %cst_46 : f32 to vector<16x16xf32>
    %134 = arith.cmpf ogt, %132, %133 : vector<16x16xf32>
    %cst_47 = arith.constant 2.000000e-01 : f32
    %135 = vector.broadcast %cst_47 : f32 to vector<16x16xf32>
    %136 = arith.mulf %135, %132 : vector<16x16xf32>
    %137 = arith.select %134, %132, %136 : vector<16x16xi1>, vector<16x16xf32>
    %cst_48 = arith.constant -1.000000e+09 : f32
    %138 = vector.broadcast %cst_48 : f32 to vector<16x16xf32>
    %139 = arith.select %21, %137, %138 : vector<16x16xi1>, vector<16x16xf32>
    %cst_49 = arith.constant dense<0xFF800000> : vector<16xf32>
    %140 = vector.multi_reduction <maximumf>, %139, %cst_49 [1] : vector<16x16xf32> to vector<16xf32>
    %141 = vector.shape_cast %140 : vector<16xf32> to vector<16x1xf32>
    %142 = vector.broadcast %141 : vector<16x1xf32> to vector<16x16xf32>
    %143 = arith.subf %139, %142 : vector<16x16xf32>
    %144 = math.exp %143 : vector<16x16xf32>
    %cst_50 = arith.constant dense<0.000000e+00> : vector<16xf32>
    %145 = vector.multi_reduction <add>, %144, %cst_50 [1] : vector<16x16xf32> to vector<16xf32>
    %146 = vector.shape_cast %145 : vector<16xf32> to vector<16x1xf32>
    %147 = tpu.reciprocal %146 {approx = true} : vector<16x1xf32> -> vector<16x1xf32>
    %148 = vector.broadcast %147 : vector<16x1xf32> to vector<16x16xf32>
    %149 = arith.mulf %144, %148 : vector<16x16xf32>
    %150 = vector.extract_strided_slice %30 {offsets = [0, 48], sizes = [16, 16], strides = [1, 1]} : vector<16x64xbf16> to vector<16x16xbf16>
    %151 = arith.truncf %149 : vector<16x16xf32> to vector<16x16xbf16>
    %cst_51 = arith.constant dense<0.000000e+00> : vector<16x16xf32>
    %152 = tpu.matmul %151, %150, %cst_51 {dimension_numbers = #tpu.dot_dimension_numbers<[1], [0], [0], [1], [0, 0, 1, 1], [], []>} : vector<16x16xbf16>, vector<16x16xbf16>, vector<16x16xf32> -> vector<16x16xf32>
    %153 = vector.extract_strided_slice %37 {offsets = [0, 48], sizes = [1, 16], strides = [1, 1]} : vector<1x64xf32> to vector<1x16xf32>
    %154 = vector.broadcast %153 : vector<1x16xf32> to vector<16x16xf32>
    %155 = arith.addf %152, %154 : vector<16x16xf32>
    %cst_52 = arith.constant 0.000000e+00 : f32
    %156 = vector.broadcast %cst_52 : f32 to vector<16x16xf32>
    %157 = arith.maximumf %155, %156 : vector<16x16xf32>
    %158 = tpu.concatenate %67, %97, %127, %157 in 1 : vector<16x16xf32>, vector<16x16xf32>, vector<16x16xf32>, vector<16x16xf32> -> vector<16x64xf32>
    %159 = arith.truncf %158 : vector<16x64xf32> to vector<16x64xbf16>
    %c0_53 = arith.constant 0 : index
    %c0_54 = arith.constant 0 : index
    %160 = vector.load %arg11[%c0_53, %c0_54] : memref<64x1xf32, #tpu.memory_space<vmem>>, vector<64x1xf32>
    %161 = arith.truncf %160 : vector<64x1xf32> to vector<64x1xbf16>
    %cst_55 = arith.constant dense<0.000000e+00> : vector<16x1xf32>
    %162 = tpu.matmul %159, %161, %cst_55 {dimension_numbers = #tpu.dot_dimension_numbers<[1], [0], [0], [1], [0, 0, 1, 1], [], []>} : vector<16x64xbf16>, vector<64x1xbf16>, vector<16x1xf32> -> vector<16x1xf32>
    %c0_56 = arith.constant 0 : index
    %c0_57 = arith.constant 0 : index
    %163 = vector.load %arg12[%c0_56, %c0_57] : memref<1x64xf32, #tpu.memory_space<vmem>>, vector<1x64xf32>
    %164 = arith.truncf %163 : vector<1x64xf32> to vector<1x64xbf16>
    %cst_58 = arith.constant dense<0.000000e+00> : vector<1x16xf32>
    %165 = tpu.matmul %164, %159, %cst_58 {dimension_numbers = #tpu.dot_dimension_numbers<[1], [1], [0], [0], [0, 0, 1, 0], [], []>} : vector<1x64xbf16>, vector<16x64xbf16>, vector<1x16xf32> -> vector<1x16xf32>
    %c0_59 = arith.constant 0 : index
    %166 = memref.load %arg0[%c0_59] : memref<3xf32, #tpu.memory_space<smem>>
    %c1 = arith.constant 1 : index
    %167 = memref.load %arg0[%c1] : memref<3xf32, #tpu.memory_space<smem>>
    %c2 = arith.constant 2 : index
    %168 = memref.load %arg0[%c2] : memref<3xf32, #tpu.memory_space<smem>>
    %169 = vector.broadcast %166 : f32 to vector<16x1xf32>
    %170 = arith.mulf %169, %162 : vector<16x1xf32>
    %171 = vector.broadcast %167 : f32 to vector<1x16xf32>
    %172 = arith.mulf %171, %165 : vector<1x16xf32>
    %173 = vector.broadcast %170 : vector<16x1xf32> to vector<16x16xf32>
    %174 = vector.broadcast %172 : vector<1x16xf32> to vector<16x16xf32>
    %175 = arith.addf %173, %174 : vector<16x16xf32>
    %cst_60 = arith.constant 0.000000e+00 : f32
    %176 = vector.broadcast %cst_60 : f32 to vector<16x16xf32>
    %177 = arith.cmpf ogt, %175, %176 : vector<16x16xf32>
    %cst_61 = arith.constant 2.000000e-01 : f32
    %178 = vector.broadcast %cst_61 : f32 to vector<16x16xf32>
    %179 = arith.mulf %178, %175 : vector<16x16xf32>
    %180 = arith.select %177, %175, %179 : vector<16x16xi1>, vector<16x16xf32>
    %cst_62 = arith.constant -1.000000e+09 : f32
    %181 = vector.broadcast %cst_62 : f32 to vector<16x16xf32>
    %182 = arith.select %21, %180, %181 : vector<16x16xi1>, vector<16x16xf32>
    %cst_63 = arith.constant dense<0xFF800000> : vector<16xf32>
    %183 = vector.multi_reduction <maximumf>, %182, %cst_63 [1] : vector<16x16xf32> to vector<16xf32>
    %184 = vector.shape_cast %183 : vector<16xf32> to vector<16x1xf32>
    %185 = vector.broadcast %184 : vector<16x1xf32> to vector<16x16xf32>
    %186 = arith.subf %182, %185 : vector<16x16xf32>
    %187 = math.exp %186 : vector<16x16xf32>
    %188 = vector.broadcast %165 : vector<1x16xf32> to vector<16x16xf32>
    %189 = arith.mulf %187, %188 : vector<16x16xf32>
    %cst_64 = arith.constant dense<0.000000e+00> : vector<16xf32>
    %190 = vector.multi_reduction <add>, %189, %cst_64 [1] : vector<16x16xf32> to vector<16xf32>
    %191 = vector.shape_cast %190 : vector<16xf32> to vector<16x1xf32>
    %cst_65 = arith.constant dense<0.000000e+00> : vector<16xf32>
    %192 = vector.multi_reduction <add>, %187, %cst_65 [1] : vector<16x16xf32> to vector<16xf32>
    %193 = vector.shape_cast %192 : vector<16xf32> to vector<16x1xf32>
    %194 = tpu.reciprocal %193 {approx = true} : vector<16x1xf32> -> vector<16x1xf32>
    %195 = arith.mulf %191, %194 : vector<16x1xf32>
    %196 = vector.broadcast %168 : f32 to vector<16x1xf32>
    %197 = arith.addf %195, %196 : vector<16x1xf32>
    %198 = arith.negf %197 : vector<16x1xf32>
    %199 = math.exp %198 : vector<16x1xf32>
    %cst_66 = arith.constant 1.000000e+00 : f32
    %200 = vector.broadcast %cst_66 : f32 to vector<16x1xf32>
    %201 = arith.addf %200, %199 : vector<16x1xf32>
    %202 = arith.divf %200, %201 : vector<16x1xf32>
    %203 = vector.broadcast %202 : vector<16x1xf32> to vector<16x32xf32>
    %204 = arith.mulf %203, %29 : vector<16x32xf32>
    %cst_67 = arith.constant dense<0.000000e+00> : vector<16x16xf32>
    %205 = tpu.matmul %204, %204, %cst_67 {dimension_numbers = #tpu.dot_dimension_numbers<[1], [1], [0], [0], [0, 0, 1, 0], [], []>} : vector<16x32xf32>, vector<16x32xf32>, vector<16x16xf32> -> vector<16x16xf32>
    %206 = arith.negf %205 : vector<16x16xf32>
    %207 = math.exp %206 : vector<16x16xf32>
    %cst_68 = arith.constant 1.000000e+00 : f32
    %208 = vector.broadcast %cst_68 : f32 to vector<16x16xf32>
    %209 = arith.addf %208, %207 : vector<16x16xf32>
    %210 = arith.divf %208, %209 : vector<16x16xf32>
    %c0_69 = arith.constant 0 : index
    %c0_70 = arith.constant 0 : index
    %211 = vector.load %arg16[%c0_69, %c0_70] : memref<16x16xf32, #tpu.memory_space<vmem>>, vector<16x16xf32>
    tpu.vector_store %arg16[%c0_69, %c0_70], %210 {strides = array<i32>} : memref<16x16xf32, #tpu.memory_space<vmem>>, vector<16x16xf32>,
    %c0_71 = arith.constant 0 : index
    %c0_72 = arith.constant 0 : index
    %212 = vector.load %arg14[%c0_71, %c0_72] : memref<2x16xf32, #tpu.memory_space<vmem>>, vector<2x16xf32>
    %213 = arith.truncf %212 : vector<2x16xf32> to vector<2x16xbf16>
    %214 = arith.truncf %204 : vector<16x32xf32> to vector<16x32xbf16>
    %cst_73 = arith.constant dense<0.000000e+00> : vector<2x32xf32>
    %215 = tpu.matmul %213, %214, %cst_73 {dimension_numbers = #tpu.dot_dimension_numbers<[1], [0], [0], [1], [0, 0, 1, 1], [], []>} : vector<2x16xbf16>, vector<16x32xbf16>, vector<2x32xf32> -> vector<2x32xf32>
    %c0_74 = arith.constant 0 : index
    %c0_75 = arith.constant 0 : index
    %216 = vector.load %arg13[%c0_74, %c0_75] : memref<16x2xf32, #tpu.memory_space<vmem>>, vector<16x2xf32>
    %217 = vector.extract_strided_slice %216 {offsets = [0, 0], sizes = [16, 1], strides = [1, 1]} : vector<16x2xf32> to vector<16x1xf32>
    %cst_76 = arith.constant 1.000000e+00 : f32
    %218 = vector.broadcast %cst_76 : f32 to vector<16x1xf32>
    %219 = arith.subf %217, %218 : vector<16x1xf32>
    %cst_77 = arith.constant 1.000000e+09 : f32
    %220 = vector.broadcast %cst_77 : f32 to vector<16x1xf32>
    %221 = arith.mulf %219, %220 : vector<16x1xf32>
    %222 = vector.broadcast %221 : vector<16x1xf32> to vector<16x32xf32>
    %223 = arith.addf %204, %222 : vector<16x32xf32>
    %cst_78 = arith.constant dense<0xFF800000> : vector<32xf32>
    %224 = vector.multi_reduction <maximumf>, %223, %cst_78 [0] : vector<16x32xf32> to vector<32xf32>
    %225 = vector.shape_cast %224 : vector<32xf32> to vector<1x32xf32>
    %226 = vector.extract_strided_slice %215 {offsets = [0, 0], sizes = [1, 32], strides = [1, 1]} : vector<2x32xf32> to vector<1x32xf32>
    %c0_79 = arith.constant 0 : index
    %c0_80 = arith.constant 0 : index
    %227 = vector.load %arg15[%c0_79, %c0_80] : memref<2x1xf32, #tpu.memory_space<vmem>>, vector<1x1xf32>
    %228 = vector.broadcast %227 : vector<1x1xf32> to vector<1x32xf32>
    %229 = arith.mulf %226, %228 : vector<1x32xf32>
    %230 = arith.addf %225, %229 : vector<1x32xf32>
    %c0_81 = arith.constant 0 : index
    %c0_82 = arith.constant 0 : index
    %231 = vector.load %arg17[%c0_81, %c0_82] : memref<2x32xf32, #tpu.memory_space<vmem>>, vector<1x32xf32>
    tpu.vector_store %arg17[%c0_81, %c0_82], %230 {strides = array<i32>} : memref<2x32xf32, #tpu.memory_space<vmem>>, vector<1x32xf32>,
    %232 = vector.extract_strided_slice %216 {offsets = [0, 1], sizes = [16, 1], strides = [1, 1]} : vector<16x2xf32> to vector<16x1xf32>
    %cst_83 = arith.constant 1.000000e+00 : f32
    %233 = vector.broadcast %cst_83 : f32 to vector<16x1xf32>
    %234 = arith.subf %232, %233 : vector<16x1xf32>
    %cst_84 = arith.constant 1.000000e+09 : f32
    %235 = vector.broadcast %cst_84 : f32 to vector<16x1xf32>
    %236 = arith.mulf %234, %235 : vector<16x1xf32>
    %237 = vector.broadcast %236 : vector<16x1xf32> to vector<16x32xf32>
    %238 = arith.addf %204, %237 : vector<16x32xf32>
    %cst_85 = arith.constant dense<0xFF800000> : vector<32xf32>
    %239 = vector.multi_reduction <maximumf>, %238, %cst_85 [0] : vector<16x32xf32> to vector<32xf32>
    %240 = vector.shape_cast %239 : vector<32xf32> to vector<1x32xf32>
    %241 = vector.extract_strided_slice %215 {offsets = [1, 0], sizes = [1, 32], strides = [1, 1]} : vector<2x32xf32> to vector<1x32xf32>
    %c1_86 = arith.constant 1 : index
    %c0_87 = arith.constant 0 : index
    %242 = vector.load %arg15[%c1_86, %c0_87] : memref<2x1xf32, #tpu.memory_space<vmem>>, vector<1x1xf32>
    %243 = vector.broadcast %242 : vector<1x1xf32> to vector<1x32xf32>
    %244 = arith.mulf %241, %243 : vector<1x32xf32>
    %245 = arith.addf %240, %244 : vector<1x32xf32>
    %c1_88 = arith.constant 1 : index
    %c0_89 = arith.constant 0 : index
    %246 = vector.load %arg17[%c1_88, %c0_89] : memref<2x32xf32, #tpu.memory_space<vmem>>, vector<1x32xf32>
    tpu.vector_store %arg17[%c1_88, %c0_89], %245 {strides = array<i32>} : memref<2x32xf32, #tpu.memory_space<vmem>>, vector<1x32xf32>,
    return
  }
}

</mosaic_0001>

<bundles_post_ra>
// kernel: model_forward.1
= control target key start
LH: loop header
LB: loop body
LE: loop exit
PB: predicated region body
PF: predicated region fallthrough
CT: control target
= control target key end

     0   :  { %s2289_s0 = inlined_call_operand.vmem [shape: f32[3], index: 0, kind: input, shape index: {}]   ;;  %s2290_s1 = inlined_call_operand.vmem [shape: s32[16,1], index: 1, kind: input, shape index: {}]   ;;  %s2291_s2 = inlined_call_operand.vmem [shape: f32[16,16], index: 2, kind: input, shape index: {}]   ;;  %s2292_s3 = inlined_call_operand.vmem [shape: f32[21,32], index: 3, kind: input, shape index: {}]   ;;  %s2293_s4 = inlined_call_operand.vmem [shape: f32[32,32], index: 4, kind: input, shape index: {}]   ;;  %s2294_s5 = inlined_call_operand.vmem [shape: f32[1,32], index: 5, kind: input, shape index: {}]   ;;  %s2295_s6 = inlined_call_operand.vmem [shape: f32[32,96], index: 6, kind: input, shape index: {}]   ;;  %s2296_s7 = inlined_call_operand.vmem [shape: f32[1,96], index: 7, kind: input, shape index: {}]   ;;  %s2297_s8 = inlined_call_operand.vmem [shape: f32[64,4], index: 8, kind: input, shape index: {}]   ;;  %s2298_s9 = inlined_call_operand.vmem [shape: f32[4,64], index: 9, kind: input, shape index: {}]   ;;  %s2299_s10 = inlined_call_operand.vmem [shape: f32[1,64], index: 10, kind: input, shape index: {}]   ;;  %s2300_s11 = inlined_call_operand.vmem [shape: f32[64,1], index: 11, kind: input, shape index: {}]   ;;  %s2301_s12 = inlined_call_operand.vmem [shape: f32[1,64], index: 12, kind: input, shape index: {}]   ;;  %s2302_s13 = inlined_call_operand.vmem [shape: f32[16,2], index: 13, kind: input, shape index: {}]   ;;  %s2303_s14 = inlined_call_operand.vmem [shape: f32[2,16], index: 14, kind: input, shape index: {}]   ;;  %s2304_s15 = inlined_call_operand.vmem [shape: f32[2,1], index: 15, kind: input, shape index: {}]   ;;  %s2305_s16 = inlined_call_operand.hbm [shape: f32[16,16], index: 16, kind: output, shape index: {0}]   ;;  %s2306_s17 = inlined_call_operand.hbm [shape: f32[2,32], index: 17, kind: output, shape index: {1}]  }
   0x1   :  { %2308 = sst [smem:[#allocation11_spill]] %s2289_s0 }
   0x2   :  { %2309 = sst [smem:[#allocation12_spill]] %s2290_s1 }
   0x3   :  { %23 = vsyncpa [#allocation4], 0 }
   0x4   :  { %24 = vsyncpa [#allocation3], 0 }
   0x5   :  { %25 = vsyncpa [#allocation7], 0  ;;  %s2310_s26 = sld [smem:[#allocation11_spill]] }
   0xb   :  { %s32_s27 = sshll.u32 %s2310_s26, 4  ;;  %s33_s27 = int_to_ptr.vmem [resolvable:$true] %s32_s27 }
   0xc   :  { %s1768_s28 = scalar_lea.vmem %s33_s27, 16  ;;  %p1773_p1 = scmp.lt.s32.totalorder %s33_s27, %s33_s27 }
   0xd   :  { %p1769_p0 = scmp.ne.s32.totalorder %s33_s27, %s1768_s28  ;;  %p1774_p2 = scmp.lt.s32.totalorder %s1768_s28, %s1768_s28 }
   0xf   :  { %p1775_p3 = por %p1774_p2, %p1773_p1 }
  0x11   :  { %p1776_p4 = pnand %p1775_p3, %p1769_p0 }
  0x13   :  { %1779 = shalt.err (!%p1776_p4)
}
  0x14   :  { %s1830_s29 = smov [#allocation2]  }
  0x15   :  { %35 = dma.vmem_to_smem %s33_s27, 16, %s1830_s29, [#allocation4]  }
  0x16   :  { %1824 = dma.done.wait [#allocation4], 16  }
  0x17   :  { %1825 = vsyncadd [#allocation4], 4294967280 }
  0x18   :  { %69 = sfence }
  0x19   :  { %s2311_s18 = sld [smem:[#allocation12_spill]]  ;;  %v87_v1 = vld [vmem:[%s2292_s3] sm:$0xff]  ;;  %v1831_v2 = vmov 0   ;;  %v88_v3 = vld [vmem:[%s2292_s3 + $0x8] sm:$0xff]  ;;  %v89_v6 = vld [vmem:[%s2292_s3 + $0x10] sm:$0x1f]  ;;  %v73_v14 = vlaneseq }
  0x1a   :  { %1676 = vset.pattern.permute.xlu0 %v1831_v2  ;;  %1677 = vset.pattern.permute.xlu1 %v1831_v2  ;;  %v1628_v4 = vpack.c.bf16 %v88_v3, %v87_v1  ;;  %vm97_vm0 = vcmask 1044480   ;;  %v178_v7 = vld [vmem:[%s2293_s4] sm:$0xff]  ;;  %v179_v8 = vld [vmem:[%s2293_s4 + $0x8] sm:$0xff]  ;;  %v180_v9 = vld [vmem:[%s2293_s4 + $0x10] sm:$0xff]  ;;  %v1832_v13 = vmov 0.0   ;;  %vm90_vm1 = vcmask 171008  }
  0x1b   :  { %v1632_v10 = vpack.c.bf16 %v179_v8, %v178_v7  ;;  %v181_v11 = vld [vmem:[%s2293_s4 + $0x18] sm:$0xff]  ;;  %v1971_v15 = vand.u32 127, %v73_v14  ;;  %vm189_vm4 = vcmask 261120   ;;  %v1979_v22 = vshrl.u32 %v73_v14, 7  ;;  %v176_v23 = vld [vmem:[%s2291_s2] sm:$0xff]  ;;  %v365_v31 = vld [vmem:[%s2295_s6 + $0x8] sm:$0xff] }
  0x1c   :  { %1629 = vmatprep.subr.bf16.mxu0 %v1628_v4  ;;  %v1636_v12 = vpack.c.bf16 %v181_v11, %v180_v9  ;;  %vm273_vm5 = vcmask 130048   ;;  %vm358_vm7 = vcmp.ne.f32.partialorder %v176_v23, 0.0  ;;  %v1438_v25 = vld [vmem:[%s2294_s5] ss:$0 sm:$0xff]  ;;  %v366_v36 = vld [vmem:[%s2295_s6 + $0x10] sm:$0xff]  ;;  %v367_v37 = vld [vmem:[%s2295_s6 + $0x18] sm:$0xff] }
  0x1d   :  { %1631 = vmatpush3.bf16.msra.mxu0 %v1628_v4  ;;  %1633 = vmatprep.subr.bf16.mxu1 %v1632_v10  ;;  %vm360_vm6 = vcmp.eq.s32.totalorder %v1979_v22, %v1971_v15  ;;  %v364_v30 = vld [vmem:[%s2295_s6] sm:$0xff]  ;;  %v2009_v38 = vld [vmem:[%s2291_s2 + $0x8] sm:$0xff]  ;;  %v1648_v39 = vpack.c.bf16 %v367_v37, %v366_v36  ;;  %v461_v42 = vld [vmem:[%s2297_s8 + $0x10] sm:$0xff]  ;;  %vm1833_vm9 = vmmov 0   ;;  %v1834_v54 = vmov 1   ;;  %s1838_s28 = smov 80  }
  0x1e   :  { %1521 = vmatprep.subr.msk.mxu0 %vm97_vm0, %v89_v6  ;;  %1635 = vmatpush3.bf16.msra.mxu1 %v1632_v10  ;;  %vm1987_vm8 = vmor %vm358_vm7, %vm360_vm6  ;;  %v1644_v35 = vpack.c.bf16 %v365_v31, %v364_v30  ;;  %v459_v40 = vld [vmem:[%s2297_s8] sm:$0xff]  ;;  %v460_v41 = vld [vmem:[%s2297_s8 + $0x8] sm:$0xff]  ;;  %vm471_vm10 = vcmask 523264   ;;  %v769_v7 = vsub.s32 2, %v1979_v22  ;;  %v866_v8 = vsub.s32 3, %v1979_v22  ;;  %s1839_s29 = smov 96  }
  0x1f   :  { %v71_v0 = vld [vmem:[%s2311_s18] sm:$0xff]  ;;  %v72_v5 = vld [vmem:[%s2311_s18 + $0x8] sm:$0xff]  ;;  %1637 = vmatprep.subr.bf16.mxu1 %v1636_v12  ;;  %v467_v43 = vpack.c.bf16 %v460_v41, %v459_v40  ;;  %v462_v44 = vld [vmem:[%s2297_s8 + $0x18] sm:$0xff]  ;;  %v357_v36 = vadd.s32 8, %v1979_v22  ;;  %vm359_vm13 = vcmp.ne.f32.partialorder %v2009_v38, 0.0  ;;  %s1840_s27 = smov 16  }
  0x20   :  { %76 = vperm.xlu0 %1676, %v71_v0   ;;  %v468_v45 = vpack.c.bf16 %v462_v44, %v461_v42  ;;  %v463_v46 = vld [vmem:[%s2297_s8 + $0x20] sm:$0xff]  ;;  %v464_v47 = vld [vmem:[%s2297_s8 + $0x28] sm:$0xff]  ;;  %v465_v51 = vld [vmem:[%s2297_s8 + $0x30] sm:$0xff] }
  0x21   :  { %1522 = vmatpush3.msk.msra.mxu0 %vm97_vm0, %v89_v6  ;;  %v469_v48 = vpack.c.bf16 %v464_v47, %v463_v46  ;;  %v466_v52 = vld [vmem:[%s2297_s8 + $0x38] sm:$0xff]  ;;  %v1443_v55 = vld [vmem:[%s2296_s7] ss:$0 sm:$0xff]  ;;  %v671_v6 = vsub.s32 1, %v1979_v22  ;;  %vm361_vm14 = vcmp.eq.s32.totalorder %v357_v36, %v1971_v15  ;;  %s1841_s8 = smov 32  }
  0x22   :  { %1555 = vmatprep.subr.bf16.mxu0 %v1832_v13  ;;  %1639 = vmatpush3.bf16.msra.mxu1 %v1636_v12  ;;  %v470_v53 = vpack.c.bf16 %v466_v52, %v465_v51  ;;  %v516_v62 = vld [vmem:[%s2298_s9] sm:$0xf]  ;;  %s1837_s9 = smov 112  }
  0x23   :  { %v517_v63 = vpack.c.bf16 %v516_v62, %v516_v62 }
  0x24   :  { %79 = vperm.xlu0 %1676, %v72_v5   ;;  %v1835_v5 = vmov 2  }
  0x28   :  { %1678 = vset.pattern.permute.xlu0 %v1834_v54 }
  0x9f   :  { %v77_v16 = vpop.permute.xlu0 %76 }
  0xa0   :  { %vm81_vm2 = vcmp.eq.s32.totalorder %v1971_v15, %v77_v16 }
  0xa1   :  { %v1433_v17 = vsel %vm81_vm2, 1.0, %v1832_v13 }
  0xa2   :  { %1523 = vmatprep.mubr.msk.f32.mxu0 %vm90_vm1, %v1433_v17 }
  0xa3   :  { %v80_v18 = vpop.permute.xlu0 %79 }
  0xa4   :  { %vm82_vm3 = vcmp.eq.s32.totalorder %v1971_v15, %v80_v18  ;;  %v1836_v18 = vmov 3  }
  0xa5   :  { %v1434_v19 = vsel %vm82_vm3, 1.0, %v1832_v13 }
  0xa6   :  { %1524 = vmatmul.mubr.msk.f32.vlgmr.msra.gmra.mrb[0].mxu0 %vm90_vm1, %v1434_v19  ;;  %v2085_v19 = vsub.s32 0, %v1979_v22  ;;  %vm2097_vm1 = vmor %vm359_vm13, %vm361_vm14 }
  0xa7   :  { %1556 = vmatpush3.bf16.msra.mxu0 %v467_v43  ;;  %1563 = vmatprep.mubr.msk.bf16.mxu0 %vm1833_vm9, %v1832_v13 }
  0xa8   :  { %1557 = vmatprep.subr.bf16.mxu0 %v1832_v13 }
  0xab   :  { %1558 = vmatpush3.bf16.msra.mxu0 %v468_v45 }
  0xac   :  { %1559 = vmatprep.subr.bf16.mxu0 %v1832_v13 }
  0xaf   :  { %1560 = vmatpush3.bf16.msra.mxu0 %v469_v48 }
  0xb0   :  { %1561 = vmatprep.subr.bf16.mxu0 %v1832_v13 }
  0xb3   :  { %1562 = vmatpush3.bf16.msra.mxu0 %v470_v53 }
  0xb4   :  { %1579 = vmatprep.subr.bf16.mxu0 %v1832_v13 }
 0x179   :  { %v1525_v20 = vpop.f32.mrb[0].mxu0 }
 0x17a   :  { %v167_v21 = vpop.f32.mrb[1].mxu0 }
 0x17b   :  { %1534 = vmatprep.mubr.msk.f32.mxu1 %vm189_vm4, %v167_v21 }
 0x17c   :  { %1535 = vmatmul.mubr.msk.f32.vlgmr.msra.gmra.mrb[0].mxu1 %vm189_vm4, %v1525_v20 }
 0x17d   :  { %1541 = vmatprep.mubr.msk.f32.mxu1 %vm273_vm5, %v176_v23 }
 0x24f   :  { %v1536_v26 = vpop.f32.mrb[0].mxu1 }
 0x250   :  { %v268_v27 = vadd.f32 %v1536_v26, %v1438_v25  ;;  %v262_v28 = vpop.f32.mrb[1].mxu1 }
 0x251   :  { %v263_v29 = vadd.f32 %v1438_v25, %v262_v28 }
 0x252   :  { %1704 = vtanh.f32 %v268_v27 }
 0x253   :  { %1706 = vtanh.f32 %v263_v29 }
 0x25c   :  { %v1705_v32 = vpop.eup %1704 }
 0x25d   :  { %v1707_v33 = vpop.eup %1706 }
 0x25e   :  { %v1640_v34 = vpack.c.bf16 %v1705_v32, %v1707_v33 }
 0x260   :  { %1641 = vmatprep.subr.bf16.mxu1 %v1640_v34 }
 0x261   :  { %1643 = vmatpush3.bf16.msra.mxu1 %v1640_v34 }
 0x262   :  { %1645 = vmatprep.subr.bf16.mxu1 %v1644_v35 }
 0x264   :  { %1542 = vmatmul.mubr.msk.f32.vlgmr.msra.gmra.mrb[2].mxu1 %vm273_vm5, %v2009_v38 }
 0x265   :  { %1647 = vmatpush3.bf16.msra.mxu1 %v1644_v35 }
 0x266   :  { %1649 = vmatprep.subr.bf16.mxu1 %v1648_v39 }
 0x269   :  { %1651 = vmatpush3.bf16.msra.mxu1 %v1648_v39 }
 0x26a   :  { %1567 = vmatprep.subr.bf16.mxu1 %v1832_v13 }
 0x337   :  { %v1543_v49 = vpop.f32.mrb[2].mxu1 }
 0x338   :  { %v346_v50 = vpop.f32.mrb[3].mxu1 }
 0x339   :  { %1552 = vmatprep.mubr.msk.f32.mxu1 %vm189_vm4, %v346_v50 }
 0x33a   :  { %1553 = vmatmul.mubr.msk.f32.vlgmr.msra.gmra.mrb[4].mxu1 %vm189_vm4, %v1543_v49 }
 0x33b   :  { %1569 = vmatprep.mubr.msk.bf16.mxu1 %vm1833_vm9, %v1832_v13 }
 0x40d   :  { %v1554_v56 = vpop.f32.mrb[4].mxu1 }
 0x40e   :  { %v2052_v57 = vadd.f32 %v1554_v56, %v1443_v55  ;;  %v447_v58 = vpop.f32.mrb[5].mxu1 }
 0x40f   :  { %v2054_v59 = vadd.f32 %v1443_v55, %v447_v58 }
 0x411   :  { %v2058_v60 = vpack.c.bf16 %v2052_v57, %v2054_v59 }
 0x413   :  { %1564 = vmatmul.mubr.msk.bf16.vlgmr.msra.gmra.mrb[4].mxu0 %vm471_vm10, %v2058_v60  ;;  %v473_v61 = vsel %vm471_vm10, %v2058_v60, 0 }
 0x414   :  { %1568 = vmatpush3.bf16.xpose.msra.mxu1 %v473_v61  ;;  %1581 = vmatprep.mubr.msk.bf16.mxu0 %vm1833_vm9, %v1832_v13 }
 0x415   :  { %1573 = vmatprep.subr.bf16.mxu1 %v1832_v13 }
 0x41b   :  { %1570 = vmatmul.mubr.msk.bf16.vlgmr.msra.gmra.mrb[8].mxu1 %vm471_vm10, %v517_v63 }
 0x41c   :  { %1574 = vmatpush3.bf16.msra.mxu1 %v2058_v60  ;;  %1575 = vmatprep.mubr.msk.bf16.mxu1 %vm1833_vm9, %v1832_v13 }
 0x41d   :  { %1585 = vmatprep.subr.bf16.mxu1 %v1832_v13 }
 0x4e6   :  { %v509_v0 = vpop.f32.mrb[4].mxu0 }
 0x4e7   :  { %662 = vperm.xlu0 %1678, %v509_v0   ;;  %564 = vperm.xlu1 %1677, %v509_v0   ;;  %v1565_v1 = vpop.f32.mrb[5].mxu0 }
 0x4e8   :  { %v512_v3 = vpop.f32.mrb[6].mxu0 }
 0x4e9   :  { %v1566_v4 = vpop.f32.mrb[7].mxu0 }
 0x4eb   :  { %1682 = vset.pattern.permute.xlu0 %v1835_v5  ;;  %1679 = vset.pattern.permute.xlu1 %v1835_v5 }
 0x4ec   :  { %760 = vperm.xlu1 %1679, %v509_v0   ;;  %764 = vperm.xlu0 %1682, %v512_v3  }
 0x4ee   :  { %v555_v9 = vpop.f32.mrb[8].mxu1 }
 0x4ef   :  { %v672_v10 = vrot.slane %v555_v9, %v671_v6  ;;  %v1571_v11 = vpop.f32.mrb[9].mxu1  ;;  %v770_v12 = vrot.slane %v555_v9, %v769_v7  ;;  %v2079_v16 = vrot.slane %v555_v9, %v866_v8  ;;  %v575_v20 = vrot.slane %v555_v9, %v2085_v19 }
 0x4f0   :  { %1680 = vset.pattern.permute.xlu1 %v1831_v2  ;;  %v558_v14 = vpop.f32.mrb[10].mxu1  ;;  %1700 = vset.pattern.permute.xlu0 %v1831_v2 }
 0x4f1   :  { %569 = vperm.xlu1 %1680, %v512_v3   ;;  %v1572_v17 = vpop.f32.mrb[11].mxu1 }
 0x4f5   :  { %1681 = vset.pattern.permute.xlu1 %v1834_v54 }
 0x4f6   :  { %666 = vperm.xlu1 %1681, %v512_v3  }
 0x4fa   :  { %1683 = vset.pattern.permute.xlu1 %v1836_v18 }
 0x4fb   :  { %857 = vperm.xlu1 %1683, %v509_v0  }
 0x4ff   :  { %861 = vperm.xlu1 %1683, %v512_v3  }
 0x503   :  { %1699 = vset.pattern.permute.xlu1 %v1831_v2 }
 0x566   :  { %v663_v21 = vpop.permute.xlu0 %662  ;;  %v565_v23 = vpop.permute.xlu1 %564 }
 0x567   :  { %v673_v25 = vadd.f32 %v672_v10, %v663_v21  ;;  %v576_v26 = vadd.f32 %v575_v20, %v565_v23 }
 0x569   :  { %v677_v27 = vmul.f32 0.2, %v673_v25  ;;  %v580_v28 = vmul.f32 0.2, %v576_v26  ;;  %vm578_vm11 = vcmp.gt.f32.partialorder %v576_v26, 0.0  ;;  %vm675_vm12 = vcmp.gt.f32.partialorder %v673_v25, 0.0 }
 0x56b   :  { %v761_v29 = vpop.permute.xlu1 %760  ;;  %v582_v30 = vsel %vm578_vm11, %v576_v26, %v580_v28  ;;  %v679_v31 = vsel %vm675_vm12, %v673_v25, %v677_v27  ;;  %v765_v37 = vpop.permute.xlu0 %764  ;;  %vm981_vm11 = vcmask 392192  }
 0x56c   :  { %v584_v32 = vsel %vm1987_vm8, %v582_v30, -1e+09  ;;  %v771_v33 = vadd.f32 %v770_v12, %v761_v29  ;;  %v681_v35 = vsel %vm1987_vm8, %v679_v31, -1e+09  ;;  %v772_v43 = vadd.f32 %v770_v12, %v765_v37 }
 0x56d   :  { %v586_v34 = vsel %vm273_vm5, %v584_v32, -inf  ;;  %v683_v42 = vsel %vm273_vm5, %v681_v35, -inf }
 0x56e   :  { %587 = vmax.xlane.f32.xlu0 %v586_v34  ;;  %v775_v40 = vmul.f32 0.2, %v771_v33  ;;  %vm773_vm15 = vcmp.gt.f32.partialorder %v771_v33, 0.0  ;;  %v776_v48 = vmul.f32 0.2, %v772_v43  ;;  %vm774_vm2 = vcmp.gt.f32.partialorder %v772_v43, 0.0 }
 0x570   :  { %v570_v39 = vpop.permute.xlu1 %569  ;;  %v777_v47 = vsel %vm773_vm15, %v771_v33, %v775_v40  ;;  %v778_v55 = vsel %vm774_vm2, %v772_v43, %v776_v48 }
 0x571   :  { %v577_v41 = vadd.f32 %v575_v20, %v570_v39  ;;  %v779_v15 = vsel %vm1987_vm8, %v777_v47, -1e+09  ;;  %v780_v0 = vsel %vm2097_vm1, %v778_v55, -1e+09 }
 0x572   :  { %684 = vmax.xlane.f32.xlu0 %v683_v42  ;;  %v781_v58 = vsel %vm273_vm5, %v779_v15, -inf  ;;  %v784_v5 = vsel %vm273_vm5, %v780_v0, -inf }
 0x573   :  { %v581_v44 = vmul.f32 0.2, %v577_v41  ;;  %vm579_vm0 = vcmp.gt.f32.partialorder %v577_v41, 0.0 }
 0x575   :  { %v667_v45 = vpop.permute.xlu1 %666  ;;  %v583_v22 = vsel %vm579_vm0, %v577_v41, %v581_v44 }
 0x576   :  { %v674_v49 = vadd.f32 %v672_v10, %v667_v45  ;;  %v585_v50 = vsel %vm2097_vm1, %v583_v22, -1e+09 }
 0x577   :  { %v589_v38 = vsel %vm273_vm5, %v585_v50, -inf }
 0x578   :  { %v678_v51 = vmul.f32 0.2, %v674_v49  ;;  %590 = vmax.xlane.f32.xlu1 %v589_v38  ;;  %vm676_vm3 = vcmp.gt.f32.partialorder %v674_v49, 0.0 }
 0x57a   :  { %v858_v52 = vpop.permute.xlu1 %857  ;;  %v680_v53 = vsel %vm676_vm3, %v674_v49, %v678_v51 }
 0x57b   :  { %v868_v56 = vadd.f32 %v2079_v16, %v858_v52  ;;  %v682_v61 = vsel %vm2097_vm1, %v680_v53, -1e+09 }
 0x57c   :  { %782 = vmax.xlane.f32.xlu1 %v781_v58  ;;  %v686_v62 = vsel %vm273_vm5, %v682_v61, -inf }
 0x57d   :  { %v872_v63 = vmul.f32 0.2, %v868_v56  ;;  %687 = vmax.xlane.f32.xlu0 %v686_v62  ;;  %vm870_vm6 = vcmp.gt.f32.partialorder %v868_v56, 0.0 }
 0x57e   :  { %v862_v1 = vpop.permute.xlu1 %861 }
 0x57f   :  { %v869_v3 = vadd.f32 %v2079_v16, %v862_v1  ;;  %v874_v4 = vsel %vm870_vm6, %v868_v56, %v872_v63 }
 0x580   :  { %v876_v6 = vsel %vm1987_vm8, %v874_v4, -1e+09 }
 0x581   :  { %v873_v7 = vmul.f32 0.2, %v869_v3  ;;  %785 = vmax.xlane.f32.xlu0 %v784_v5  ;;  %v878_v8 = vsel %vm273_vm5, %v876_v6, -inf  ;;  %vm871_vm7 = vcmp.gt.f32.partialorder %v869_v3, 0.0 }
 0x582   :  { %879 = vmax.xlane.f32.xlu1 %v878_v8 }
 0x583   :  { %v875_v9 = vsel %vm871_vm7, %v869_v3, %v873_v7 }
 0x584   :  { %v877_v10 = vsel %vm2097_vm1, %v875_v9, -1e+09 }
 0x585   :  { %v881_v11 = vsel %vm273_vm5, %v877_v10, -inf }
 0x586   :  { %882 = vmax.xlane.f32.xlu0 %v881_v11 }
 0x593   :  { %707 = vrot.lane.b32.xlu1 %v2058_v60, %s1837_s9 }
 0x5fb   :  { %v588_v12 = vpop.xlane.xlu0 %587 }
 0x5fc   :  { %v592_v14 = vsub.f32 %v584_v32, %v588_v12 }
 0x5fe   :  { %v594_v16 = vmul.f32 1.442695, %v592_v14 }
 0x5ff   :  { %v685_v17 = vpop.xlane.xlu0 %684 }
 0x600   :  { %1708 = vpow2.f32 %v594_v16  ;;  %v689_v18 = vsub.f32 %v681_v35, %v685_v17 }
 0x602   :  { %v691_v20 = vmul.f32 1.442695, %v689_v18 }
 0x604   :  { %1710 = vpow2.f32 %v691_v20 }
 0x605   :  { %v591_v21 = vpop.xlane.xlu1 %590 }
 0x606   :  { %v593_v23 = vsub.f32 %v585_v50, %v591_v21 }
 0x608   :  { %v596_v25 = vmul.f32 1.442695, %v593_v23 }
 0x609   :  { %v783_v26 = vpop.xlane.xlu1 %782 }
 0x60a   :  { %v2123_v27 = vpop.eup %1708  ;;  %1712 = vpow2.f32 %v596_v25  ;;  %v787_v28 = vsub.f32 %v779_v15, %v783_v26  ;;  %v688_v29 = vpop.xlane.xlu0 %687 }
 0x60b   :  { %v690_v30 = vsub.f32 %v682_v61, %v688_v29  ;;  %v598_v31 = vsel %vm273_vm5, %v2123_v27, 0.0  ;;  %v2143_v61 = vld [vmem:[%s2299_s10] ss:$0 sm:$0xff]  ;;  %s1843_s10 = smov 64  }
 0x60c   :  { %v789_v32 = vmul.f32 1.442695, %v787_v28  ;;  %599 = vadd.xlane.f32.xlu1 %v598_v31 }
 0x60d   :  { %v693_v33 = vmul.f32 1.442695, %v690_v30 }
 0x60e   :  { %v2127_v34 = vpop.eup %1710  ;;  %1714 = vpow2.f32 %v789_v32  ;;  %v786_v35 = vpop.xlane.xlu0 %785 }
 0x60f   :  { %1716 = vpow2.f32 %v693_v33  ;;  %v788_v36 = vsub.f32 %v780_v0, %v786_v35  ;;  %v880_v37 = vpop.xlane.xlu1 %879  ;;  %v695_v39 = vsel %vm273_vm5, %v2127_v34, 0.0  ;;  %v985_v33 = vld [vmem:[%s2300_s11] sm:$0xff] }
 0x610   :  { %v884_v40 = vsub.f32 %v876_v6, %v880_v37  ;;  %696 = vadd.xlane.f32.xlu1 %v695_v39 }
 0x611   :  { %v791_v41 = vmul.f32 1.442695, %v788_v36 }
 0x612   :  { %v886_v42 = vmul.f32 1.442695, %v884_v40  ;;  %v987_v40 = vld [vmem:[%s2300_s11 + $0x10] sm:$0xff] }
 0x613   :  { %1718 = vpow2.f32 %v791_v41  ;;  %v708_v43 = vpop.permute.xlu1 %707  ;;  %v883_v44 = vpop.xlane.xlu0 %882  ;;  %v988_v41 = vld [vmem:[%s2300_s11 + $0x18] sm:$0xff] }
 0x614   :  { %v1713_v45 = vpop.eup %1712  ;;  %1720 = vpow2.f32 %v886_v42  ;;  %v885_v22 = vsub.f32 %v877_v10, %v883_v44  ;;  %1580 = vmatpush3.bf16.msra.mxu0 %v708_v43  ;;  %v994_v44 = vpack.c.bf16 %v988_v41, %v987_v40 }
 0x615   :  { %v601_v47 = vsel %vm273_vm5, %v1713_v45, 0.0  ;;  %1591 = vmatprep.subr.bf16.mxu0 %v1832_v13 }
 0x616   :  { %v888_v48 = vmul.f32 1.442695, %v885_v22  ;;  %602 = vadd.xlane.f32.xlu0 %v601_v47 }
 0x618   :  { %v1715_v49 = vpop.eup %1714  ;;  %1722 = vpow2.f32 %v888_v48  ;;  %v989_v48 = vld [vmem:[%s2300_s11 + $0x20] sm:$0xff] }
 0x619   :  { %v1717_v50 = vpop.eup %1716  ;;  %v793_v38 = vsel %vm273_vm5, %v1715_v49, 0.0 }
 0x61a   :  { %794 = vadd.xlane.f32.xlu1 %v793_v38  ;;  %v698_v51 = vsel %vm273_vm5, %v1717_v50, 0.0 }
 0x61b   :  { %699 = vadd.xlane.f32.xlu0 %v698_v51 }
 0x61d   :  { %v1719_v15 = vpop.eup %1718 }
 0x61e   :  { %v1721_v52 = vpop.eup %1720  ;;  %v796_v53 = vsel %vm273_vm5, %v1719_v15, 0.0 }
 0x61f   :  { %797 = vadd.xlane.f32.xlu0 %v796_v53  ;;  %v890_v55 = vsel %vm273_vm5, %v1721_v52, 0.0 }
 0x620   :  { %891 = vadd.xlane.f32.xlu1 %v890_v55 }
 0x622   :  { %v1723_v56 = vpop.eup %1722 }
 0x623   :  { %v893_v58 = vsel %vm273_vm5, %v1723_v56, 0.0 }
 0x624   :  { %894 = vadd.xlane.f32.xlu0 %v893_v58 }
 0x631   :  { %901 = vrot.lane.b32.xlu1 %v2058_v60, %s1838_s28 }
 0x635   :  { %710 = vrot.lane.b32.xlu1 %v2143_v61, %s1837_s9 }
 0x639   :  { %904 = vrot.lane.b32.xlu1 %v2143_v61, %s1838_s28  ;;  %s1086_s28 = sld [smem:[#allocation2]] }
 0x63a   :  { %804 = vrot.lane.b32.xlu0 %v2058_v60, %s1839_s29 }
 0x63e   :  { %807 = vrot.lane.b32.xlu0 %v2143_v61, %s1839_s29  ;;  %s1455_s29 = sld [smem:[#allocation2 + $0x1]] }
 0x699   :  { %v600_v62 = vpop.xlane.xlu1 %599 }
 0x69a   :  { %1724 = vrcp.f32 %v600_v62 }
 0x69d   :  { %v697_v0 = vpop.xlane.xlu1 %696 }
 0x6a3   :  { %v603_v63 = vpop.xlane.xlu0 %602 }
 0x6a4   :  { %1726 = vrcp.f32 %v603_v63  ;;  %v1725_v3 = vpop.eup %1724  ;;  %v991_v63 = vld [vmem:[%s2300_s11 + $0x30] sm:$0xff] }
 0x6a5   :  { %1728 = vrcp.f32 %v697_v0  ;;  %v606_v7 = vmul.f32 %v1725_v3, %v2123_v27  ;;  %v992_v0 = vld [vmem:[%s2300_s11 + $0x38] sm:$0xff] }
 0x6a7   :  { %v795_v1 = vpop.xlane.xlu1 %794 }
 0x6a8   :  { %v700_v60 = vpop.xlane.xlu0 %699 }
 0x6a9   :  { %1730 = vrcp.f32 %v700_v60  ;;  %v996_v60 = vpack.c.bf16 %v992_v0, %v991_v63 }
 0x6aa   :  { %1732 = vrcp.f32 %v795_v1 }
 0x6ac   :  { %v798_v4 = vpop.xlane.xlu0 %797 }
 0x6ad   :  { %1734 = vrcp.f32 %v798_v4  ;;  %v892_v5 = vpop.xlane.xlu1 %891 }
 0x6ae   :  { %v1727_v6 = vpop.eup %1726  ;;  %1736 = vrcp.f32 %v892_v5 }
 0x6af   :  { %v607_v8 = vmul.f32 %v1727_v6, %v1713_v45  ;;  %v1729_v9 = vpop.eup %1728 }
 0x6b0   :  { %v703_v14 = vmul.f32 %v1729_v9, %v2127_v34  ;;  %v986_v34 = vld [vmem:[%s2300_s11 + $0x8] sm:$0xff] }
 0x6b1   :  { %v895_v10 = vpop.xlane.xlu0 %894  ;;  %v608_v11 = vpack.c.bf16 %v607_v8, %v606_v7  ;;  %v902_v26 = vpop.permute.xlu1 %901  ;;  %v993_v35 = vpack.c.bf16 %v986_v34, %v985_v33 }
 0x6b2   :  { %1738 = vrcp.f32 %v895_v10 }
 0x6b3   :  { %v1731_v12 = vpop.eup %1730  ;;  %1576 = vmatmul.mubr.msk.bf16.vlgmr.msra.gmra.mrb[12].mxu1 %vm273_vm5, %v608_v11 }
 0x6b4   :  { %v704_v16 = vmul.f32 %v1731_v12, %v1717_v50  ;;  %1587 = vmatprep.mubr.msk.bf16.mxu1 %vm1833_vm9, %v1832_v13  ;;  %v1733_v17 = vpop.eup %1732 }
 0x6b5   :  { %v805_v18 = vpop.permute.xlu0 %804  ;;  %v801_v23 = vmul.f32 %v1733_v17, %v1715_v49  ;;  %v711_v43 = vpop.permute.xlu1 %710  ;;  %v990_v49 = vld [vmem:[%s2300_s11 + $0x28] sm:$0xff]  ;;  %s1842_s11 = smov 48  }
 0x6b6   :  { %1586 = vmatpush3.bf16.msra.mxu1 %v805_v18  ;;  %v705_v20 = vpack.c.bf16 %v704_v16, %v703_v14  ;;  %v995_v51 = vpack.c.bf16 %v990_v49, %v989_v48 }
 0x6b7   :  { %v1735_v21 = vpop.eup %1734  ;;  %1597 = vmatprep.subr.bf16.mxu1 %v1832_v13 }
 0x6b8   :  { %v802_v25 = vmul.f32 %v1735_v21, %v1719_v15  ;;  %1582 = vmatmul.mubr.msk.bf16.vlgmr.msra.gmra.mrb[8].mxu0 %vm273_vm5, %v705_v20  ;;  %v1737_v27 = vpop.eup %1736 }
 0x6b9   :  { %1592 = vmatpush3.bf16.msra.mxu0 %v902_v26  ;;  %1593 = vmatprep.mubr.msk.bf16.mxu0 %vm1833_vm9, %v1832_v13  ;;  %v898_v30 = vmul.f32 %v1737_v27, %v1721_v52  ;;  %v808_v38 = vpop.permute.xlu0 %807  ;;  %v905_v6 = vpop.permute.xlu1 %904 }
 0x6ba   :  { %v803_v28 = vpack.c.bf16 %v802_v25, %v801_v23  ;;  %1609 = vmatprep.subr.bf16.mxu0 %v1832_v13 }
 0x6bc   :  { %v1739_v29 = vpop.eup %1738  ;;  %1588 = vmatmul.mubr.msk.bf16.vlgmr.msra.gmra.mrb[16].mxu1 %vm273_vm5, %v803_v28 }
 0x6bd   :  { %v899_v31 = vmul.f32 %v1739_v29, %v1723_v56  ;;  %1605 = vmatprep.mubr.msk.bf16.mxu1 %vm1833_vm9, %v1832_v13  ;;  %1598 = vmatpush3.bf16.msra.mxu1 %v993_v35 }
 0x6be   :  { %1599 = vmatprep.subr.bf16.mxu1 %v1832_v13 }
 0x6bf   :  { %v900_v32 = vpack.c.bf16 %v899_v31, %v898_v30 }
 0x6c1   :  { %1594 = vmatmul.mubr.msk.bf16.vlgmr.msra.gmra.mrb[12].mxu0 %vm273_vm5, %v900_v32  ;;  %1600 = vmatpush3.bf16.msra.mxu1 %v994_v44 }
 0x6c2   :  { %1611 = vmatprep.mubr.msk.bf16.mxu0 %vm1833_vm9, %v1832_v13  ;;  %1601 = vmatprep.subr.bf16.mxu1 %v1832_v13 }
 0x6c5   :  { %1602 = vmatpush3.bf16.msra.mxu1 %v995_v51 }
 0x6c6   :  { %1603 = vmatprep.subr.bf16.mxu1 %v1832_v13 }
 0x6c9   :  { %1604 = vmatpush3.bf16.msra.mxu1 %v996_v60 }
 0x786   :  { %v652_v36 = vpop.f32.mrb[12].mxu1 }
 0x787   :  { %v1577_v37 = vpop.f32.mrb[13].mxu1  ;;  %v653_v25 = vadd.f32 %v2143_v61, %v652_v36 }
 0x788   :  { %v655_v39 = vpop.f32.mrb[14].mxu1 }
 0x789   :  { %v1578_v42 = vpop.f32.mrb[15].mxu1  ;;  %v656_v26 = vadd.f32 %v2143_v61, %v655_v39  ;;  %v659_v32 = vmax.f32 %v653_v25, 0.0 }
 0x78b   :  { %v750_v45 = vpop.f32.mrb[8].mxu0  ;;  %v660_v33 = vmax.f32 %v656_v26, 0.0 }
 0x78c   :  { %v751_v22 = vadd.f32 %v750_v45, %v711_v43  ;;  %v1583_v47 = vpop.f32.mrb[9].mxu0  ;;  %v1041_v45 = vld [vmem:[%s2301_s12] sm:$0x1]  ;;  %s1456_s12 = sld [smem:[#allocation2 + $0x2]] }
 0x78d   :  { %v753_v50 = vpop.f32.mrb[10].mxu0  ;;  %v1089_v47 = vstv %s1086_s28 }
 0x78e   :  { %v754_v15 = vadd.f32 %v753_v50, %v711_v43  ;;  %v1584_v52 = vpop.f32.mrb[11].mxu0  ;;  %v757_v55 = vmax.f32 %v751_v22, 0.0  ;;  %v1042_v22 = vpack.c.bf16 %v1041_v45, %v1041_v45 }
 0x78f   :  { %v847_v53 = vpop.f32.mrb[16].mxu1 }
 0x790   :  { %v758_v56 = vmax.f32 %v754_v15, 0.0  ;;  %v848_v58 = vadd.f32 %v847_v53, %v808_v38  ;;  %v1589_v62 = vpop.f32.mrb[17].mxu1 }
 0x791   :  { %v850_v1 = vpop.f32.mrb[18].mxu1 }
 0x792   :  { %v1684_v3 = vpack.i.bf16 %v758_v56, %v757_v55  ;;  %v851_v4 = vadd.f32 %v850_v1, %v808_v38  ;;  %v1590_v5 = vpop.f32.mrb[19].mxu1  ;;  %v854_v7 = vmax.f32 %v848_v58, 0.0  ;;  %v1092_v58 = vstv %s1455_s29 }
 0x794   :  { %v855_v8 = vmax.f32 %v851_v4, 0.0  ;;  %1685 = vrot.lane.b32.xlu0 %v1684_v3, %s1840_s27  ;;  %v944_v9 = vpop.f32.mrb[12].mxu0 }
 0x795   :  { %v945_v10 = vadd.f32 %v944_v9, %v905_v6  ;;  %v1595_v11 = vpop.f32.mrb[13].mxu0 }
 0x796   :  { %v1689_v12 = vpack.i.bf16 %v855_v8, %v854_v7  ;;  %v947_v14 = vpop.f32.mrb[14].mxu0 }
 0x797   :  { %v948_v16 = vadd.f32 %v947_v14, %v905_v6  ;;  %v1596_v17 = vpop.f32.mrb[15].mxu0  ;;  %v951_v18 = vmax.f32 %v945_v10, 0.0 }
 0x798   :  { %1690 = vrot.lane.b32.xlu1 %v1689_v12, %s1841_s8 }
 0x799   :  { %v952_v20 = vmax.f32 %v948_v16, 0.0 }
 0x79b   :  { %v1694_v21 = vpack.i.bf16 %v952_v20, %v951_v18 }
 0x79d   :  { %1695 = vrot.lane.b32.xlu0 %v1694_v21, %s1842_s11 }
 0x806   :  { %v1686_v23 = vpop.permute.xlu0 %1685 }
 0x807   :  { %v1688_v28 = vunpack.i.h.bf16 %v1686_v23  ;;  %v1687_v29 = vunpack.i.l.bf16 %v1686_v23 }
 0x809   :  { %v977_v35 = vsel %vm273_vm5, %v659_v32, %v1687_v29  ;;  %v978_v37 = vsel %vm273_vm5, %v660_v33, %v1688_v28  ;;  %v1152_v32 = vstv %s1456_s12 }
 0x80a   :  { %v1691_v27 = vpop.permute.xlu1 %1690 }
 0x80b   :  { %v1693_v30 = vunpack.i.h.bf16 %v1691_v27  ;;  %v1692_v31 = vunpack.i.l.bf16 %v1691_v27 }
 0x80d   :  { %v980_v42 = vsel %vm189_vm4, %v978_v37, %v1693_v30  ;;  %v979_v36 = vsel %vm189_vm4, %v977_v35, %v1692_v31 }
 0x80f   :  { %v1696_v34 = vpop.permute.xlu0 %1695 }
 0x810   :  { %v1698_v40 = vunpack.i.h.bf16 %v1696_v34  ;;  %v1697_v41 = vunpack.i.l.bf16 %v1696_v34 }
 0x812   :  { %v982_v61 = vsel %vm981_vm11, %v979_v36, %v1697_v41  ;;  %v983_v39 = vsel %vm981_vm11, %v980_v42, %v1698_v40 }
 0x813   :  { %v984_v43 = vpack.c.bf16 %v983_v39, %v982_v61 }
 0x815   :  { %1606 = vmatmul.mubr.msk.bf16.vlgmr.msra.gmra.mrb[20].mxu1 %vm471_vm10, %v984_v43  ;;  %v998_v44 = vsel %vm471_vm10, %v984_v43, 0 }
 0x816   :  { %1610 = vmatpush3.bf16.xpose.msra.mxu0 %v998_v44 }
 0x81d   :  { %1612 = vmatmul.mubr.msk.bf16.vlgmr.msra.gmra.mrb[16].mxu0 %vm471_vm10, %v1042_v22 }
 0x8e8   :  { %v1034_v48 = vpop.f32.mrb[20].mxu1 }
 0x8e9   :  { %v1090_v49 = vmul.f32 %v1089_v47, %v1034_v48  ;;  %v1607_v50 = vpop.f32.mrb[21].mxu1 }
 0x8ea   :  { %v1037_v38 = vpop.f32.mrb[22].mxu1 }
 0x8eb   :  { %v1091_v51 = vmul.f32 %v1089_v47, %v1037_v38  ;;  %1096 = vperm.xlu1 %1699, %v1090_v49   ;;  %v1608_v15 = vpop.f32.mrb[23].mxu1  ;;  %v1319_v38 = vld [vmem:[%s2302_s13 + $0x8] sm:$0xff] }
 0x8ec   :  { %v1467_v15 = vadd.f32 -1.0, %v1319_v38 }
 0x8ed   :  { %1101 = vperm.xlu0 %1700, %v1091_v51  }
 0x8f0   :  { %v1080_v52 = vpop.f32.mrb[16].mxu0 }
 0x8f1   :  { %v1613_v53 = vpop.f32.mrb[17].mxu0  ;;  %v1093_v62 = vmul.f32 %v1092_v58, %v1080_v52  ;;  %v1133_v24 = vrot.slane %v1080_v52, %v2085_v19  ;;  %v1346_v52 = vld [vmem:[%s2304_s15] sm:$0x1] }
 0x8f2   :  { %v1083_v55 = vpop.f32.mrb[18].mxu0 }
 0x8f3   :  { %v1614_v56 = vpop.f32.mrb[19].mxu0  ;;  %v1107_v63 = vrot.slane %v1093_v62, %v2085_v19  ;;  %v1383_v55 = vld [vmem:[%s2304_s15 + $0x1] sm:$0x1] }
 0x8f4   :  { %v1323_v56 = vmul.f32 1e+09, %v1467_v15 }
 0x96a   :  { %v1097_v0 = vpop.permute.xlu1 %1096 }
 0x96b   :  { %v1108_v1 = vadd.f32 %v1107_v63, %v1097_v0 }
 0x96c   :  { %v1102_v60 = vpop.permute.xlu0 %1101 }
 0x96d   :  { %v1112_v3 = vmul.f32 0.2, %v1108_v1  ;;  %v1109_v4 = vadd.f32 %v1107_v63, %v1102_v60  ;;  %vm1110_vm10 = vcmp.gt.f32.partialorder %v1108_v1, 0.0 }
 0x96f   :  { %v1113_v5 = vmul.f32 0.2, %v1109_v4  ;;  %v1114_v6 = vsel %vm1110_vm10, %v1108_v1, %v1112_v3  ;;  %vm1111_vm12 = vcmp.gt.f32.partialorder %v1109_v4, 0.0  ;;  %v1268_v1 = vld [vmem:[%s2303_s14] sm:$0x3]  ;;  %s1844_s14 = smov [#allocation5]  }
 0x970   :  { %v1116_v7 = vsel %vm1987_vm8, %v1114_v6, -1e+09  ;;  %vm1653_vm8 = vmpackc.low %vm189_vm4, %vm189_vm4  ;;  %s1407_s1 = sshll.u32 %s1844_s14, 4  ;;  %s1408_s1 = int_to_ptr.vmem [resolvable:$true] %s1407_s1 }
 0x971   :  { %v1118_v8 = vsel %vm273_vm5, %v1116_v7, -inf  ;;  %v1115_v9 = vsel %vm1111_vm12, %v1109_v4, %v1113_v5  ;;  %s1780_s20 = scalar_lea.vmem %s1408_s1, 256  ;;  %p1785_p6 = scmp.lt.s32.totalorder %s1408_s1, %s1408_s1 }
 0x972   :  { %1119 = vmax.xlane.f32.xlu1 %v1118_v8  ;;  %v1117_v10 = vsel %vm2097_vm1, %v1115_v9, -1e+09  ;;  %p1781_p5 = scmp.ne.s32.totalorder %s1408_s1, %s1780_s20  ;;  %p1786_p7 = scmp.lt.s32.totalorder %s1780_s20, %s1780_s20 }
 0x973   :  { %v1121_v11 = vsel %vm273_vm5, %v1117_v10, -inf }
 0x974   :  { %1122 = vmax.xlane.f32.xlu0 %v1121_v11  ;;  %p1787_p8 = por %p1786_p7, %p1785_p6 }
 0x976   :  { %p1788_p9 = pnand %p1787_p8, %p1781_p5 }
 0x9ff   :  { %v1120_v12 = vpop.xlane.xlu1 %1119 }
 0xa00   :  { %v1124_v14 = vsub.f32 %v1116_v7, %v1120_v12 }
 0xa01   :  { %v1123_v16 = vpop.xlane.xlu0 %1122 }
 0xa02   :  { %v1126_v17 = vmul.f32 1.442695, %v1124_v14  ;;  %v1125_v18 = vsub.f32 %v1117_v10, %v1123_v16 }
 0xa04   :  { %1740 = vpow2.f32 %v1126_v17  ;;  %v1128_v20 = vmul.f32 1.442695, %v1125_v18 }
 0xa06   :  { %1742 = vpow2.f32 %v1128_v20 }
 0xa0e   :  { %v1741_v21 = vpop.eup %1740 }
 0xa0f   :  { %v1142_v23 = vsel %vm273_vm5, %v1741_v21, 0.0  ;;  %v1134_v25 = vmul.f32 %v1741_v21, %v1133_v24 }
 0xa10   :  { %v1743_v26 = vpop.eup %1742  ;;  %1143 = vadd.xlane.f32.xlu1 %v1142_v23 }
 0xa11   :  { %v1145_v46 = vsel %vm273_vm5, %v1743_v26, 0.0  ;;  %v1135_v27 = vmul.f32 %v1743_v26, %v1133_v24  ;;  %v1136_v28 = vsel %vm273_vm5, %v1134_v25, 0.0 }
 0xa12   :  { %1146 = vadd.xlane.f32.xlu0 %v1145_v46 }
 0xa13   :  { %v1139_v29 = vsel %vm273_vm5, %v1135_v27, 0.0 }
 0xa14   :  { %1137 = vadd.xlane.f32.xlu1 %v1136_v28 }
 0xa16   :  { %1140 = vadd.xlane.f32.xlu0 %v1139_v29 }
 0xa9d   :  { %v1144_v30 = vpop.xlane.xlu1 %1143 }
 0xa9e   :  { %1744 = vrcp.f32 %v1144_v30 }
 0xa9f   :  { %v1147_v31 = vpop.xlane.xlu0 %1146 }
 0xaa0   :  { %1746 = vrcp.f32 %v1147_v31 }
 0xaa1   :  { %v1138_v33 = vpop.xlane.xlu1 %1137 }
 0xaa3   :  { %v1141_v37 = vpop.xlane.xlu0 %1140 }
 0xaa8   :  { %v1745_v19 = vpop.eup %1744 }
 0xaa9   :  { %v1150_v34 = vmul.f32 %v1745_v19, %v1138_v33 }
 0xaaa   :  { %v1747_v35 = vpop.eup %1746 }
 0xaab   :  { %v1153_v40 = vadd.f32 %v1152_v32, %v1150_v34  ;;  %v1151_v41 = vmul.f32 %v1747_v35, %v1141_v37 }
 0xaad   :  { %v1457_v42 = vmul.f32 -1.442695, %v1153_v40  ;;  %v1154_v36 = vadd.f32 %v1152_v32, %v1151_v41 }
 0xaaf   :  { %1748 = vpow2.f32 %v1457_v42  ;;  %v1458_v61 = vmul.f32 -1.442695, %v1154_v36 }
 0xab1   :  { %1750 = vpow2.f32 %v1458_v61 }
 0xab2   :  { %1752 = vtanh.f32 %v2054_v59 }
 0xab9   :  { %v1749_v39 = vpop.eup %1748 }
 0xaba   :  { %v1161_v43 = vadd.f32 1.0, %v1749_v39 }
 0xabb   :  { %v1751_v44 = vpop.eup %1750 }
 0xabc   :  { %1754 = vrcp.f32 %v1161_v43  ;;  %v1162_v45 = vadd.f32 1.0, %v1751_v44  ;;  %v1753_v22 = vpop.eup %1752 }
 0xabd   :  { %1756 = vtanh.f32 %v2052_v57  ;;  %v1318_v57 = vld [vmem:[%s2302_s13] sm:$0xff] }
 0xabe   :  { %1758 = vrcp.f32 %v1162_v45  ;;  %v1466_v53 = vadd.f32 -1.0, %v1318_v57 }
 0xac0   :  { %v1322_v58 = vmul.f32 1e+09, %v1466_v53 }
 0xac6   :  { %v1755_v47 = vpop.eup %1754 }
 0xac7   :  { %v1757_v48 = vpop.eup %1756  ;;  %v2218_v49 = vmul.f32 %v1755_v47, %v1753_v22 }
 0xac8   :  { %v1759_v50 = vpop.eup %1758 }
 0xac9   :  { %1171 = vrot.lane.b32.xlu1 %v2218_v49, %s1843_s10  ;;  %v2225_v59 = vmul.f32 %v1759_v50, %v1757_v48 }
 0xacb   :  { %1173 = vrot.lane.b32.xlu0 %v2225_v59, %s1843_s10  ;;  %v1270_v51 = vpack.c.bf16 %v2225_v59, %v2218_v49 }
 0xacd   :  { %1272 = vrot.lane.b32.xlu1 %v1270_v51, %s1843_s10 }
 0xacf   :  { %1349 = vperm.xlu0 %1700, %v1346_v52  }
 0xad1   :  { %1386 = vperm.xlu1 %1699, %v1383_v55  }
 0xad3   :  { %1331 = vperm.xlu0 %1700, %v1323_v56  }
 0xad5   :  { %1326 = vperm.xlu1 %1699, %v1322_v58  }
 0xad7   :  { %1702 = vset.pattern.permute.xlu0 %v1834_v54 }
 0xad8   :  { %1369 = vperm.xlu0 %1702, %v1323_v56  }
 0xad9   :  { %1701 = vset.pattern.permute.xlu1 %v1834_v54 }
 0xada   :  { %1365 = vperm.xlu1 %1701, %v1322_v58  }
 0xadc   :  { %1703 = vset.pattern.permute.xlu0 %v1831_v2  ;;  %v1269_v2 = vpack.c.bf16 %v1268_v1, %v1268_v1 }
 0xb3b   :  { %v1172_v62 = vpop.permute.xlu1 %1171 }
 0xb3c   :  { %1619 = vmatprep.mubr.msk.f32.mxu0 %vm189_vm4, %v1172_v62 }
 0xb3d   :  { %v1174_v63 = vpop.permute.xlu0 %1173 }
 0xb3e   :  { %v1652_v0 = vpack.c.bf16 %v1174_v63, %v1172_v62 }
 0xb3f   :  { %v1273_v54 = vpop.permute.xlu1 %1272 }
 0xb40   :  { %1654 = vmatprep.subr.msk.bf16.mxu0 %vm1653_vm8, %v1652_v0 }
 0xb41   :  { %1657 = vmatpush3.bf16.xpose.msk.msra.mxu0 %vm1653_vm8, %v1652_v0 }
 0xb42   :  { %1622 = vmatprep.subr.bf16.mxu0 %v1832_v13 }
 0xb48   :  { %1620 = vmatmul.mubr.msk.f32.vlgmr.msra.gmra.mrb[2].mxu0 %vm189_vm4, %v1174_v63  ;;  %vm1336_vm4 = vcmask 785920  }
 0xb49   :  { %1623 = vmatpush3.bf16.msra.mxu0 %v1273_v54  ;;  %1624 = vmatprep.mubr.msk.bf16.mxu0 %vm1833_vm9, %v1832_v13 }
 0xb4c   :  { %1625 = vmatmul.mubr.msk.bf16.vlgmr.msra.gmra.mrb[20].mxu0 %vm273_vm5, %v1269_v2 }
 0xb4e   :  { %v1350_v8 = vpop.permute.xlu0 %1349 }
 0xb50   :  { %v1387_v60 = vpop.permute.xlu1 %1386 }
 0xb51   :  { %v1388_v7 = vrot.slane %v1387_v60, 7 }
 0xb52   :  { %v1332_v26 = vpop.permute.xlu0 %1331 }
 0xb53   :  { %v1335_v28 = vadd.f32 %v1332_v26, %v2225_v59 }
 0xb54   :  { %v1327_v25 = vpop.permute.xlu1 %1326 }
 0xb55   :  { %v1334_v46 = vadd.f32 %v1327_v25, %v2218_v49  ;;  %v1338_v19 = vsel %vm1336_vm4, %v1335_v28, -inf }
 0xb57   :  { %v1370_v29 = vpop.permute.xlu0 %1369  ;;  %v1337_v30 = vsel %vm1336_vm4, %v1334_v46, -inf }
 0xb58   :  { %v1373_v32 = vadd.f32 %v1370_v29, %v2225_v59  ;;  %v1339_v33 = vmax.f32 %v1337_v30, %v1338_v19 }
 0xb59   :  { %v1366_v27 = vpop.permute.xlu1 %1365 }
 0xb5a   :  { %v1372_v31 = vadd.f32 %v1366_v27, %v2218_v49  ;;  %v1375_v35 = vsel %vm1336_vm4, %v1373_v32, -inf  ;;  %v1340_v37 = vrot.slane %v1339_v33, 4 }
 0xb5c   :  { %v1374_v34 = vsel %vm1336_vm4, %v1372_v31, -inf  ;;  %v1341_v41 = vmax.f32 %v1339_v33, %v1340_v37 }
 0xb5d   :  { %v1376_v40 = vmax.f32 %v1374_v34, %v1375_v35 }
 0xb5e   :  { %v1342_v61 = vrot.slane %v1341_v41, 2 }
 0xb5f   :  { %v1377_v42 = vrot.slane %v1376_v40, 4 }
 0xb60   :  { %v1343_v39 = vmax.f32 %v1341_v41, %v1342_v61 }
 0xb61   :  { %v1378_v36 = vmax.f32 %v1376_v40, %v1377_v42 }
 0xb62   :  { %v1344_v44 = vrot.slane %v1343_v39, 1 }
 0xb63   :  { %v1379_v43 = vrot.slane %v1378_v36, 2 }
 0xb65   :  { %v1380_v45 = vmax.f32 %v1378_v36, %v1379_v43 }
 0xc1b   :  { %v1621_v3 = vpop.f32.mrb[2].mxu0 }
 0xc1c   :  { %v1464_v4 = vmul.f32 -1.442695, %v1621_v3  ;;  %v1245_v5 = vpop.f32.mrb[3].mxu0 }
 0xc1d   :  { %v1463_v6 = vmul.f32 -1.442695, %v1245_v5 }
 0xc1e   :  { %1760 = vpow2.f32 %v1464_v4 }
 0xc1f   :  { %1762 = vpow2.f32 %v1463_v6  ;;  %v1312_v9 = vpop.f32.mrb[20].mxu0 }
 0xc20   :  { %v1352_v10 = vmul.f32 %v1350_v8, %v1312_v9  ;;  %v1390_v11 = vmul.f32 %v1388_v7, %v1312_v9  ;;  %v1626_v12 = vpop.f32.mrb[21].mxu0 }
 0xc21   :  { %v1315_v14 = vpop.f32.mrb[22].mxu0 }
 0xc22   :  { %1354 = vrot.lane.b32.xlu1 %v1352_v10, %s1843_s10  ;;  %v1627_v16 = vpop.f32.mrb[23].mxu0  ;;  %v1392_v13 = vrot.slane %v1390_v11, 1 }
 0xc26   :  { %1393 = vrot.lane.b32.xlu1 %v1392_v13, %s1843_s10 }
 0xc28   :  { %v1761_v17 = vpop.eup %1760 }
 0xc29   :  { %v1763_v18 = vpop.eup %1762  ;;  %v1261_v20 = vadd.f32 1.0, %v1761_v17 }
 0xc2a   :  { %v1260_v24 = vadd.f32 1.0, %v1763_v18 }
 0xc2b   :  { %1764 = vrcp.f32 %v1261_v20 }
 0xc2c   :  { %1766 = vrcp.f32 %v1260_v24 }
 0xc35   :  { %v1765_v21 = vpop.eup %1764 }
 0xc36   :  { %v1767_v23 = vpop.eup %1766  ;;  %1267 = vst.msk [vmem:[#allocation5 + $0x8] sm:$0xff] %vm273_vm5, %v1765_v21 }
 0xc37   :  { %1266 = vst.msk [vmem:[#allocation5] sm:$0xff] %vm273_vm5, %v1767_v23 }
 0xc38   :  { %1791 = shalt.err (!%p1788_p9)
}
 0xc39   :  { %s1792_s23 = scalar_lea.hbm %s2305_s16, 256 }
 0xc3a   :  { %p1793_p10 = scmp.ne.s32.totalorder %s2305_s16, %s1792_s23  ;;  %p1796_p11 = scmp.lt.u32.totalorder %s1792_s23, %s2305_s16 }
 0xc3c   :  { %p1798_p12 = pnand %p1796_p11, %p1793_p10 }
 0xc3e   :  { %1801 = shalt.err (!%p1798_p12)
}
 0xc3f   :  { %s1845_s27 = smov 128   ;;  %s1846_s8 = smov 8   ;;  %v1345_v22 = vmax.f32 %v1343_v39, %v1344_v44  ;;  %v1381_v47 = vrot.slane %v1380_v45, 1  ;;  %vm1362_vm5 = vcmask 253952  }
 0xc40   :  { %1413 = dma.vmem_to_hbm [thread:$0]  %s1408_s1, 256, %s2305_s16, [#allocation3], %s1845_s27, %s1845_s27, %s1846_s8  }
 0xc41   :  { %v1382_v50 = vmax.f32 %v1380_v45, %v1381_v47  ;;  %s1847_s9 = smov [#allocation6]  }
 0xc42   :  { %s1420_s28 = sshll.u32 %s1847_s9, 4  ;;  %s1421_s28 = int_to_ptr.vmem [resolvable:$true] %s1420_s28 }
 0xc43   :  { %s1802_s16 = scalar_lea.vmem %s1421_s28, 32  ;;  %p1807_p0 = scmp.lt.s32.totalorder %s1421_s28, %s1421_s28 }
 0xc44   :  { %p1803_p13 = scmp.ne.s32.totalorder %s1421_s28, %s1802_s16  ;;  %p1808_p1 = scmp.lt.s32.totalorder %s1802_s16, %s1802_s16 }
 0xc46   :  { %p1809_p2 = por %p1808_p1, %p1807_p0 }
 0xc48   :  { %p1810_p3 = pnand %p1809_p2, %p1803_p13 }
 0xc94   :  { %v1355_v48 = vpop.permute.xlu1 %1354 }
 0xc95   :  { %v1357_v49 = vadd.f32 %v1355_v48, %v1345_v22 }
 0xc97   :  { %1359 = vrot.lane.b32.xlu0 %v1357_v49, %s1843_s10 }
 0xc98   :  { %v1394_v38 = vpop.permute.xlu1 %1393 }
 0xc99   :  { %v1396_v59 = vadd.f32 %v1394_v38, %v1382_v50 }
 0xc9b   :  { %1398 = vrot.lane.b32.xlu1 %v1396_v59, %s1843_s10 }
 0xd09   :  { %v1360_v57 = vpop.permute.xlu0 %1359 }
 0xd0a   :  { %1363 = vst.msk [vmem:[#allocation6] sm:$0x1] %vm1362_vm5, %v1360_v57 }
 0xd0d   :  { %v1399_v51 = vpop.permute.xlu1 %1398 }
 0xd0e   :  { %1401 = vst.msk [vmem:[#allocation6 + $0x1] sm:$0x1] %vm1362_vm5, %v1399_v51 }
 0xd0f   :  { %1813 = shalt.err (!%p1810_p3)
}
 0xd10   :  { %s1814_s0 = scalar_lea.hbm %s2306_s17, 32 }
 0xd11   :  { %p1815_p4 = scmp.ne.s32.totalorder %s2306_s17, %s1814_s0  ;;  %p1818_p5 = scmp.lt.u32.totalorder %s1814_s0, %s2306_s17 }
 0xd13   :  { %p1820_p6 = pnand %p1818_p5, %p1815_p4 }
 0xd15   :  { %1823 = shalt.err (!%p1820_p6)
}
 0xd16   :  { %1423 = dma.vmem_to_hbm [thread:$0]  %s1421_s28, 32, %s2306_s17, [#allocation7]  }
 0xd17   :  { %1826 = dma.done.wait [#allocation3], 256  }
 0xd18   :  { %1827 = vsyncadd [#allocation3], 4294967040 }
 0xd19   :  { %1828 = dma.done.wait [#allocation7], 32  }
 0xd1a   :  { %1829 = vsyncadd [#allocation7], 4294967264 }
 0xd1b   :  { %1430 = vsyncpa [#allocation3], 1 }
 0xd1c   :  { %1431 = vsyncpa [#allocation7], 1 }
 0xd1d   :  { %1432 = vsyncpa [#allocation4], 1 }

</bundles_post_ra>
